<compile_context>
chip_gen: v5e
topology: v5e:2x2
jax: 0.10.0
libtpu: 0.0.40
codegen_flags: <defaults>
</compile_context>

<pallas_src>
import jax
import jax.numpy as jnp
from jax.experimental import pallas as pl
from jax.experimental.pallas import tpu as pltpu


# ------------------------------- kernel --------------------------------------

def _bottleneck_kernel(xc_ref, xt_ref, xb_ref,
                       w1_ref, b1_ref, w2_ref, b2_ref, w3_ref, b3_ref,
                       o_ref, buf_ref):
    """Fused bottleneck on one (batch, row-tile) block.

    xc_ref : (1, TH, W, Cin)  centre row-tile of the input (also the residual)
    xt_ref : (1, 1,  W, Cin)  row above the tile (masked to 0 at image top)
    xb_ref : (1, 1,  W, Cin)  row below the tile (masked to 0 at image bottom)
    w1/w2/w3 : BN-folded weights (Cin,P), (9P,P), (P,4P);  b1/b2/b3: f32 (1,C)
    o_ref  : (1, TH, W, 4P)
    buf_ref: (TH+2, W+2, P) f32 scratch -- SAME-padded conv1 output (halo buf)
    """
    TH, W, Cout = o_ref.shape[1], o_ref.shape[2], o_ref.shape[3]
    Cin = xc_ref.shape[3]
    P = w1_ref.shape[1]
    h = pl.program_id(1)
    last_h = pl.num_programs(1) - 1

    w1 = w1_ref[...]
    b1 = b1_ref[...]

    def conv1(rows_2d):  # (R, Cin) -> (R, P) in f32 (bias + relu fused)
        acc = jnp.dot(rows_2d, w1, preferred_element_type=jnp.float32)
        return jnp.maximum(acc + b1, 0.0)

    centre = xc_ref[0]                                  # (TH, W, Cin)
    a1 = conv1(centre.reshape(TH * W, Cin))             # (TH*W, P)
    top = conv1(xt_ref[0, 0])                           # (W, P)
    bot = conv1(xb_ref[0, 0])                           # (W, P)

    # SAME-padded halo buffer for the 3x3 conv (zeros = W padding / image edge).
    buf_ref[...] = jnp.zeros_like(buf_ref)
    buf_ref[1:TH + 1, 1:W + 1, :] = a1.reshape(TH, W, P)
    buf_ref[0, 1:W + 1, :] = jnp.where(h > 0, top, 0.0)
    buf_ref[TH + 1, 1:W + 1, :] = jnp.where(h < last_h, bot, 0.0)

    # conv2 (3x3): im2col -> one (TH*W, 9P) @ (9P, P) matmul.
    patches = jnp.concatenate(
        [buf_ref[dy:dy + TH, dx:dx + W, :].reshape(TH * W, P)
         for dy in range(3) for dx in range(3)],
        axis=1).astype(w2_ref.dtype)
    acc2 = jnp.dot(patches, w2_ref[...], preferred_element_type=jnp.float32)
    a2 = jnp.maximum(acc2 + b2_ref[...], 0.0).astype(w3_ref.dtype)   # (TH*W, P)

    # conv3 (1x1) + residual add + relu.
    acc3 = jnp.dot(a2, w3_ref[...], preferred_element_type=jnp.float32)
    y = acc3 + b3_ref[...] + centre.reshape(TH * W, Cin).astype(jnp.float32)
    o_ref[...] = jnp.maximum(y, 0.0).reshape(1, TH, W, Cout).astype(o_ref.dtype)


# ------------------------------ wrappers --------------------------------------

def _pick_tile_rows(H, W, cin, planes, itemsize, vmem_budget_bytes=8 << 20):
    """Largest divisor of H whose per-step live buffers fit a modest VMEM budget."""
    per_row = W * (2 * cin * itemsize                 # x centre tile (double buffered)
                   + (planes + 9 * planes) * 4        # halo buffer + im2col (f32)
                   + 2 * 4 * planes * itemsize)       # output tile (double buffered)
    th = max(1, min(H, vmem_budget_bytes // max(per_row, 1)))
    while H % th:
        th -= 1
    return int(th)


def bottleneck_forward_nhwc(x_nhwc, p, *, tile_rows=None):
    """Fused Bottleneck forward on NHWC activations (stride=1, no downsample)."""
    N, H, W, Cin = x_nhwc.shape
    P = p["w1"].shape[1]
    assert Cin == 4 * P, "no-downsample Bottleneck needs inplanes == 4*planes"
    if tile_rows is None:
        tile_rows = _pick_tile_rows(H, W, Cin, P, jnp.dtype(x_nhwc.dtype).itemsize)
    TH = int(tile_rows)
    assert H % TH == 0, "tile_rows must divide H"
    nH = H // TH

    centre_map = lambda n, h: (n, h, 0, 0)
    top_map = lambda n, h: (n, jnp.maximum(h * TH - 1, 0), 0, 0)
    bot_map = lambda n, h: (n, jnp.minimum((h + 1) * TH, H - 1), 0, 0)
    const = lambda n, h: (0, 0)

    return pl.pallas_call(
        _bottleneck_kernel,
        out_shape=jax.ShapeDtypeStruct((N, H, W, 4 * P), x_nhwc.dtype),
        grid=(N, nH),
        in_specs=[
            pl.BlockSpec((1, TH, W, Cin), centre_map),
            pl.BlockSpec((1, 1, W, Cin), top_map),
            pl.BlockSpec((1, 1, W, Cin), bot_map),
            pl.BlockSpec((Cin, P), const),
            pl.BlockSpec((1, P), const),
            pl.BlockSpec((9 * P, P), const),
            pl.BlockSpec((1, P), const),
            pl.BlockSpec((P, 4 * P), const),
            pl.BlockSpec((1, 4 * P), const),
        ],
        out_specs=pl.BlockSpec((1, TH, W, 4 * P), centre_map),
        scratch_shapes=[pltpu.VMEM((TH + 2, W + 2, P), jnp.float32)],
        compiler_params=pltpu.CompilerParams(
            dimension_semantics=("parallel", "parallel")),
    )(x_nhwc, x_nhwc, x_nhwc,
      p["w1"], p["b1"], p["w2"], p["b2"], p["w3"], p["b3"])


def bottleneck_forward(x_nchw, p, *, tile_rows=None):
    """PyTorch-layout (NCHW) wrapper. Stacked blocks should stay NHWC and call
    bottleneck_forward_nhwc directly so the transposes amortize to the model edge."""
    x = jnp.transpose(x_nchw, (0, 2, 3, 1))
    out = bottleneck_forward_nhwc(x, p, tile_rows=tile_rows)
    return jnp.transpose(out, (0, 3, 1, 2))


# --------------------------- parameter setup ---------------------------------

def make_raw_params(key, inplanes, planes, dtype=jnp.float32):
    """Deterministic synthetic weights matching nn.Conv2d / nn.BatchNorm2d shapes."""
    ks = jax.random.split(key, 18)

    def n(i, shape, s=0.1):
        return (s * jax.random.normal(ks[i], shape)).astype(dtype)

    raw = {
        "cw1": n(0, (planes, inplanes, 1, 1)), "cb1": n(1, (planes,)),
        "cw2": n(2, (planes, planes, 3, 3)), "cb2": n(3, (planes,)),
        "cw3": n(4, (4 * planes, planes, 1, 1)), "cb3": n(5, (4 * planes,)),
    }
    for i, c in zip((6, 10, 14), (planes, planes, 4 * planes)):
        tag = {6: "1", 10: "2", 14: "3"}[i]
        raw["g" + tag] = (1.0 + 0.1 * jax.random.normal(ks[i], (c,))).astype(dtype)
        raw["be" + tag] = n(i + 1, (c,))
        raw["m" + tag] = n(i + 2, (c,))
        raw["v" + tag] = (1.0 + 0.5 * jax.random.uniform(ks[i + 3], (c,))).astype(dtype)
    return raw


def fold_params(raw, eps=1e-3, dtype=jnp.float32):
    """Fold conv bias + inference BN (scale into weights, shift into bias)."""
    def fold(g, be, m, v, cb):
        scale = g / jnp.sqrt(v + eps)
        bias = be + (cb - m) * scale
        return scale, bias.astype(jnp.float32)

    planes = raw["cw1"].shape[0]
    s1, b1 = fold(raw["g1"], raw["be1"], raw["m1"], raw["v1"], raw["cb1"])
    s2, b2 = fold(raw["g2"], raw["be2"], raw["m2"], raw["v2"], raw["cb2"])
    s3, b3 = fold(raw["g3"], raw["be3"], raw["m3"], raw["v3"], raw["cb3"])

    w1 = jnp.transpose(raw["cw1"][:, :, 0, 0], (1, 0)) * s1[None, :]            # (Cin, P)
    w2 = jnp.transpose(raw["cw2"], (2, 3, 1, 0)).reshape(9 * planes, planes)    # (9P, P)
    w2 = w2 * s2[None, :]
    w3 = jnp.transpose(raw["cw3"][:, :, 0, 0], (1, 0)) * s3[None, :]            # (P, 4P)

    return {
        "w1": w1.astype(dtype), "b1": b1[None, :],
        "w2": w2.astype(dtype), "b2": b2[None, :],
        "w3": w3.astype(dtype), "b3": b3[None, :],
    }


# ----------------------------- JAX reference ---------------------------------

def reference_forward(x, raw, eps=1e-3):
    def conv(x, w, b):
        y = jax.lax.conv_general_dilated(
            x, w, (1, 1), "VALID", dimension_numbers=("NCHW", "OIHW", "NCHW"))
        return y + b[None, :, None, None]

    def bn(x, g, be, m, v):
        return ((x - m[None, :, None, None]) /
                jnp.sqrt(v[None, :, None, None] + eps)) * g[None, :, None, None] \
               + be[None, :, None, None]

    out = jax.nn.relu(bn(conv(x, raw["cw1"], raw["cb1"]),
                         raw["g1"], raw["be1"], raw["m1"], raw["v1"]))
    out = jnp.pad(out, ((0, 0), (0, 0), (1, 1), (1, 1)))           # SamePad2d(3,1)
    out = jax.nn.relu(bn(conv(out, raw["cw2"], raw["cb2"]),
                         raw["g2"], raw["be2"], raw["m2"], raw["v2"]))
    out = bn(conv(out, raw["cw3"], raw["cb3"]),
             raw["g3"], raw["be3"], raw["m3"], raw["v3"])
    return jax.nn.relu(out + x)


# --------------------------------- main --------------------------------------

if __name__ == "__main__":
    key = jax.random.PRNGKey(0)
    kx, kp = jax.random.split(key)

    N, inplanes, planes, H, W = 2, 16, 4, 16, 16   # inplanes == 4*planes (no downsample)
    x = jax.random.normal(kx, (N, inplanes, H, W), jnp.float32)

    raw = make_raw_params(kp, inplanes, planes)
    ref = jax.block_until_ready(reference_forward(x, raw))

    # f32, row-tiled (TH=8 exercises the inter-tile halo path).
    p32 = fold_params(raw, dtype=jnp.float32)
    out = jax.block_until_ready(bottleneck_forward(x, p32, tile_rows=8))
    assert out.shape == (N, 4 * planes, H, W)
    assert jnp.allclose(out, ref, atol=1e-4, rtol=1e-4), \
        f"f32 tiled max abs err {jnp.max(jnp.abs(out - ref))}"

    # f32, one row-tile per image (image-boundary halo path).
    out_full = jax.block_until_ready(bottleneck_forward(x, p32, tile_rows=H))
    assert jnp.allclose(out_full, ref, atol=1e-4, rtol=1e-4), \
        f"f32 full-tile max abs err {jnp.max(jnp.abs(out_full - ref))}"

    # bf16 activations + weights (f32 accumulation / epilogue inside the kernel).
    p16 = fold_params(raw, dtype=jnp.bfloat16)
    out16 = jax.block_until_ready(
        bottleneck_forward(x.astype(jnp.bfloat16), p16, tile_rows=8))
    assert out16.dtype == jnp.bfloat16
    assert jnp.allclose(out16.astype(jnp.float32), ref, atol=1e-1, rtol=1e-1), \
        f"bf16 max abs err {jnp.max(jnp.abs(out16.astype(jnp.float32) - ref))}"

    print("KERNEL_OK")
</pallas_src>

<mosaic_0001>
module attributes {stable_mosaic.version = 11 : i64} {
  func.func @_bottleneck_kernel(%arg0: i32, %arg1: i32, %arg2: memref<1x8x16x16xf32, #tpu.memory_space<vmem>>, %arg3: memref<1x1x16x16xf32, #tpu.memory_space<vmem>>, %arg4: memref<1x1x16x16xf32, #tpu.memory_space<vmem>>, %arg5: memref<16x4xf32, #tpu.memory_space<vmem>>, %arg6: memref<1x4xf32, #tpu.memory_space<vmem>>, %arg7: memref<36x4xf32, #tpu.memory_space<vmem>>, %arg8: memref<1x4xf32, #tpu.memory_space<vmem>>, %arg9: memref<4x16xf32, #tpu.memory_space<vmem>>, %arg10: memref<1x16xf32, #tpu.memory_space<vmem>>, %arg11: memref<1x8x16x16xf32, #tpu.memory_space<vmem>>, %arg12: memref<10x18x4xf32, #tpu.memory_space<vmem>>) attributes {dimension_semantics = [#tpu.dimension_semantics<parallel>, #tpu.dimension_semantics<parallel>], iteration_bounds = array<i64: 2, 2>, scalar_prefetch = 0 : i64, scratch_operands = 1 : i64, tpu.core_type = #tpu.core_type<tc>, window_params = [{transform_indices = @transform_0, window_bounds = array<i64: 1, 8, 16, 16>}, {transform_indices = @transform_1, window_bounds = array<i64: 1, 1, 16, 16>}, {transform_indices = @transform_2, window_bounds = array<i64: 1, 1, 16, 16>}, {pipeline_mode = #tpu.pipeline_mode<synchronous>, transform_indices = @transform_3, window_bounds = array<i64: 16, 4>}, {pipeline_mode = #tpu.pipeline_mode<synchronous>, transform_indices = @transform_4, window_bounds = array<i64: 1, 4>}, {pipeline_mode = #tpu.pipeline_mode<synchronous>, transform_indices = @transform_5, window_bounds = array<i64: 36, 4>}, {pipeline_mode = #tpu.pipeline_mode<synchronous>, transform_indices = @transform_6, window_bounds = array<i64: 1, 4>}, {pipeline_mode = #tpu.pipeline_mode<synchronous>, transform_indices = @transform_7, window_bounds = array<i64: 4, 16>}, {pipeline_mode = #tpu.pipeline_mode<synchronous>, transform_indices = @transform_8, window_bounds = array<i64: 1, 16>}, {transform_indices = @transform_9, window_bounds = array<i64: 1, 8, 16, 16>}]} {
    %c0 = arith.constant 0 : index
    %c0_0 = arith.constant 0 : index
    %0 = vector.load %arg5[%c0, %c0_0] : memref<16x4xf32, #tpu.memory_space<vmem>>, vector<16x4xf32>
    %c0_1 = arith.constant 0 : index
    %c0_2 = arith.constant 0 : index
    %1 = vector.load %arg6[%c0_1, %c0_2] : memref<1x4xf32, #tpu.memory_space<vmem>>, vector<1x4xf32>
    %c0_3 = arith.constant 0 : index
    %c0_4 = arith.constant 0 : index
    %c0_5 = arith.constant 0 : index
    %c0_6 = arith.constant 0 : index
    %2 = vector.load %arg2[%c0_3, %c0_4, %c0_5, %c0_6] : memref<1x8x16x16xf32, #tpu.memory_space<vmem>>, vector<1x8x16x16xf32>
    %3 = vector.shape_cast %2 : vector<1x8x16x16xf32> to vector<8x16x16xf32>
    %4 = vector.shape_cast %3 : vector<8x16x16xf32> to vector<128x16xf32>
    %cst = arith.constant dense<0.000000e+00> : vector<128x4xf32>
    %5 = tpu.matmul %4, %0, %cst {dimension_numbers = #tpu.dot_dimension_numbers<[1], [0], [0], [1], [0, 0, 1, 1], [], []>} : vector<128x16xf32>, vector<16x4xf32>, vector<128x4xf32> -> vector<128x4xf32>
    %6 = vector.broadcast %1 : vector<1x4xf32> to vector<128x4xf32>
    %7 = arith.addf %5, %6 : vector<128x4xf32>
    %cst_7 = arith.constant 0.000000e+00 : f32
    %8 = vector.broadcast %cst_7 : f32 to vector<128x4xf32>
    %9 = arith.maximumf %7, %8 : vector<128x4xf32>
    %c0_8 = arith.constant 0 : index
    %c0_9 = arith.constant 0 : index
    %c0_10 = arith.constant 0 : index
    %c0_11 = arith.constant 0 : index
    %10 = vector.load %arg3[%c0_8, %c0_9, %c0_10, %c0_11] : memref<1x1x16x16xf32, #tpu.memory_space<vmem>>, vector<1x1x16x16xf32>
    %11 = vector.shape_cast %10 : vector<1x1x16x16xf32> to vector<16x16xf32>
    %cst_12 = arith.constant dense<0.000000e+00> : vector<16x4xf32>
    %12 = tpu.matmul %11, %0, %cst_12 {dimension_numbers = #tpu.dot_dimension_numbers<[1], [0], [0], [1], [0, 0, 1, 1], [], []>} : vector<16x16xf32>, vector<16x4xf32>, vector<16x4xf32> -> vector<16x4xf32>
    %13 = vector.broadcast %1 : vector<1x4xf32> to vector<16x4xf32>
    %14 = arith.addf %12, %13 : vector<16x4xf32>
    %cst_13 = arith.constant 0.000000e+00 : f32
    %15 = vector.broadcast %cst_13 : f32 to vector<16x4xf32>
    %16 = arith.maximumf %14, %15 : vector<16x4xf32>
    %c0_14 = arith.constant 0 : index
    %c0_15 = arith.constant 0 : index
    %c0_16 = arith.constant 0 : index
    %c0_17 = arith.constant 0 : index
    %17 = vector.load %arg4[%c0_14, %c0_15, %c0_16, %c0_17] : memref<1x1x16x16xf32, #tpu.memory_space<vmem>>, vector<1x1x16x16xf32>
    %18 = vector.shape_cast %17 : vector<1x1x16x16xf32> to vector<16x16xf32>
    %cst_18 = arith.constant dense<0.000000e+00> : vector<16x4xf32>
    %19 = tpu.matmul %18, %0, %cst_18 {dimension_numbers = #tpu.dot_dimension_numbers<[1], [0], [0], [1], [0, 0, 1, 1], [], []>} : vector<16x16xf32>, vector<16x4xf32>, vector<16x4xf32> -> vector<16x4xf32>
    %20 = vector.broadcast %1 : vector<1x4xf32> to vector<16x4xf32>
    %21 = arith.addf %19, %20 : vector<16x4xf32>
    %cst_19 = arith.constant 0.000000e+00 : f32
    %22 = vector.broadcast %cst_19 : f32 to vector<16x4xf32>
    %23 = arith.maximumf %21, %22 : vector<16x4xf32>
    %cst_20 = arith.constant 0.000000e+00 : f32
    %24 = vector.broadcast %cst_20 : f32 to vector<10x18x4xf32>
    %c0_21 = arith.constant 0 : index
    %c0_22 = arith.constant 0 : index
    %c0_23 = arith.constant 0 : index
    %25 = vector.load %arg12[%c0_21, %c0_22, %c0_23] : memref<10x18x4xf32, #tpu.memory_space<vmem>>, vector<10x18x4xf32>
    tpu.vector_store %arg12[%c0_21, %c0_22, %c0_23], %24 {strides = array<i32>} : memref<10x18x4xf32, #tpu.memory_space<vmem>>, vector<10x18x4xf32>,
    %26 = vector.shape_cast %9 : vector<128x4xf32> to vector<8x16x4xf32>
    %c1 = arith.constant 1 : index
    %c1_24 = arith.constant 1 : index
    %c0_25 = arith.constant 0 : index
    %27 = vector.load %arg12[%c1, %c1_24, %c0_25] : memref<10x18x4xf32, #tpu.memory_space<vmem>>, vector<8x16x4xf32>
    tpu.vector_store %arg12[%c1, %c1_24, %c0_25], %26 {strides = array<i32>} : memref<10x18x4xf32, #tpu.memory_space<vmem>>, vector<8x16x4xf32>,
    %c0_i32 = arith.constant 0 : i32
    %28 = arith.cmpi sgt, %arg1, %c0_i32 : i32
    %cst_26 = arith.constant 0.000000e+00 : f32
    %29 = vector.broadcast %cst_26 : f32 to vector<16x4xf32>
    %30 = arith.select %28, %16, %29 : vector<16x4xf32>
    %c0_27 = arith.constant 0 : index
    %c1_28 = arith.constant 1 : index
    %c0_29 = arith.constant 0 : index
    %31 = vector.load %arg12[%c0_27, %c1_28, %c0_29] : memref<10x18x4xf32, #tpu.memory_space<vmem>>, vector<1x16x4xf32>
    %32 = vector.shape_cast %31 : vector<1x16x4xf32> to vector<16x4xf32>
    %33 = vector.shape_cast %30 : vector<16x4xf32> to vector<1x16x4xf32>
    tpu.vector_store %arg12[%c0_27, %c1_28, %c0_29], %33 {strides = array<i32>} : memref<10x18x4xf32, #tpu.memory_space<vmem>>, vector<1x16x4xf32>,
    %c1_i32 = arith.constant 1 : i32
    %34 = arith.cmpi slt, %arg1, %c1_i32 : i32
    %cst_30 = arith.constant 0.000000e+00 : f32
    %35 = vector.broadcast %cst_30 : f32 to vector<16x4xf32>
    %36 = arith.select %34, %23, %35 : vector<16x4xf32>
    %c9 = arith.constant 9 : index
    %c1_31 = arith.constant 1 : index
    %c0_32 = arith.constant 0 : index
    %37 = vector.load %arg12[%c9, %c1_31, %c0_32] : memref<10x18x4xf32, #tpu.memory_space<vmem>>, vector<1x16x4xf32>
    %38 = vector.shape_cast %37 : vector<1x16x4xf32> to vector<16x4xf32>
    %39 = vector.shape_cast %36 : vector<16x4xf32> to vector<1x16x4xf32>
    tpu.vector_store %arg12[%c9, %c1_31, %c0_32], %39 {strides = array<i32>} : memref<10x18x4xf32, #tpu.memory_space<vmem>>, vector<1x16x4xf32>,
    %c0_33 = arith.constant 0 : index
    %c0_34 = arith.constant 0 : index
    %c0_35 = arith.constant 0 : index
    %40 = vector.load %arg12[%c0_33, %c0_34, %c0_35] : memref<10x18x4xf32, #tpu.memory_space<vmem>>, vector<8x16x4xf32>
    %41 = vector.shape_cast %40 : vector<8x16x4xf32> to vector<128x4xf32>
    %c0_36 = arith.constant 0 : index
    %c1_37 = arith.constant 1 : index
    %c0_38 = arith.constant 0 : index
    %42 = vector.load %arg12[%c0_36, %c1_37, %c0_38] : memref<10x18x4xf32, #tpu.memory_space<vmem>>, vector<8x16x4xf32>
    %43 = vector.shape_cast %42 : vector<8x16x4xf32> to vector<128x4xf32>
    %c0_39 = arith.constant 0 : index
    %c2 = arith.constant 2 : index
    %c0_40 = arith.constant 0 : index
    %44 = vector.load %arg12[%c0_39, %c2, %c0_40] : memref<10x18x4xf32, #tpu.memory_space<vmem>>, vector<8x16x4xf32>
    %45 = vector.shape_cast %44 : vector<8x16x4xf32> to vector<128x4xf32>
    %c1_41 = arith.constant 1 : index
    %c0_42 = arith.constant 0 : index
    %c0_43 = arith.constant 0 : index
    %46 = vector.load %arg12[%c1_41, %c0_42, %c0_43] : memref<10x18x4xf32, #tpu.memory_space<vmem>>, vector<8x16x4xf32>
    %47 = vector.shape_cast %46 : vector<8x16x4xf32> to vector<128x4xf32>
    %c1_44 = arith.constant 1 : index
    %c1_45 = arith.constant 1 : index
    %c0_46 = arith.constant 0 : index
    %48 = vector.load %arg12[%c1_44, %c1_45, %c0_46] : memref<10x18x4xf32, #tpu.memory_space<vmem>>, vector<8x16x4xf32>
    %49 = vector.shape_cast %48 : vector<8x16x4xf32> to vector<128x4xf32>
    %c1_47 = arith.constant 1 : index
    %c2_48 = arith.constant 2 : index
    %c0_49 = arith.constant 0 : index
    %50 = vector.load %arg12[%c1_47, %c2_48, %c0_49] : memref<10x18x4xf32, #tpu.memory_space<vmem>>, vector<8x16x4xf32>
    %51 = vector.shape_cast %50 : vector<8x16x4xf32> to vector<128x4xf32>
    %c2_50 = arith.constant 2 : index
    %c0_51 = arith.constant 0 : index
    %c0_52 = arith.constant 0 : index
    %52 = vector.load %arg12[%c2_50, %c0_51, %c0_52] : memref<10x18x4xf32, #tpu.memory_space<vmem>>, vector<8x16x4xf32>
    %53 = vector.shape_cast %52 : vector<8x16x4xf32> to vector<128x4xf32>
    %c2_53 = arith.constant 2 : index
    %c1_54 = arith.constant 1 : index
    %c0_55 = arith.constant 0 : index
    %54 = vector.load %arg12[%c2_53, %c1_54, %c0_55] : memref<10x18x4xf32, #tpu.memory_space<vmem>>, vector<8x16x4xf32>
    %55 = vector.shape_cast %54 : vector<8x16x4xf32> to vector<128x4xf32>
    %c2_56 = arith.constant 2 : index
    %c2_57 = arith.constant 2 : index
    %c0_58 = arith.constant 0 : index
    %56 = vector.load %arg12[%c2_56, %c2_57, %c0_58] : memref<10x18x4xf32, #tpu.memory_space<vmem>>, vector<8x16x4xf32>
    %57 = vector.shape_cast %56 : vector<8x16x4xf32> to vector<128x4xf32>
    %58 = tpu.concatenate %41, %43, %45, %47, %49, %51, %53, %55, %57 in 1 : vector<128x4xf32>, vector<128x4xf32>, vector<128x4xf32>, vector<128x4xf32>, vector<128x4xf32>, vector<128x4xf32>, vector<128x4xf32>, vector<128x4xf32>, vector<128x4xf32> -> vector<128x36xf32>
    %c0_59 = arith.constant 0 : index
    %c0_60 = arith.constant 0 : index
    %59 = vector.load %arg7[%c0_59, %c0_60] : memref<36x4xf32, #tpu.memory_space<vmem>>, vector<36x4xf32>
    %cst_61 = arith.constant dense<0.000000e+00> : vector<128x4xf32>
    %60 = tpu.matmul %58, %59, %cst_61 {dimension_numbers = #tpu.dot_dimension_numbers<[1], [0], [0], [1], [0, 0, 1, 1], [], []>} : vector<128x36xf32>, vector<36x4xf32>, vector<128x4xf32> -> vector<128x4xf32>
    %c0_62 = arith.constant 0 : index
    %c0_63 = arith.constant 0 : index
    %61 = vector.load %arg8[%c0_62, %c0_63] : memref<1x4xf32, #tpu.memory_space<vmem>>, vector<1x4xf32>
    %62 = vector.broadcast %61 : vector<1x4xf32> to vector<128x4xf32>
    %63 = arith.addf %60, %62 : vector<128x4xf32>
    %cst_64 = arith.constant 0.000000e+00 : f32
    %64 = vector.broadcast %cst_64 : f32 to vector<128x4xf32>
    %65 = arith.maximumf %63, %64 : vector<128x4xf32>
    %c0_65 = arith.constant 0 : index
    %c0_66 = arith.constant 0 : index
    %66 = vector.load %arg9[%c0_65, %c0_66] : memref<4x16xf32, #tpu.memory_space<vmem>>, vector<4x16xf32>
    %cst_67 = arith.constant dense<0.000000e+00> : vector<128x16xf32>
    %67 = tpu.matmul %65, %66, %cst_67 {dimension_numbers = #tpu.dot_dimension_numbers<[1], [0], [0], [1], [0, 0, 1, 1], [], []>} : vector<128x4xf32>, vector<4x16xf32>, vector<128x16xf32> -> vector<128x16xf32>
    %c0_68 = arith.constant 0 : index
    %c0_69 = arith.constant 0 : index
    %68 = vector.load %arg10[%c0_68, %c0_69] : memref<1x16xf32, #tpu.memory_space<vmem>>, vector<1x16xf32>
    %69 = vector.broadcast %68 : vector<1x16xf32> to vector<128x16xf32>
    %70 = arith.addf %67, %69 : vector<128x16xf32>
    %71 = vector.shape_cast %3 : vector<8x16x16xf32> to vector<128x16xf32>
    %72 = arith.addf %70, %71 : vector<128x16xf32>
    %cst_70 = arith.constant 0.000000e+00 : f32
    %73 = vector.broadcast %cst_70 : f32 to vector<128x16xf32>
    %74 = arith.maximumf %72, %73 : vector<128x16xf32>
    %75 = vector.shape_cast %74 : vector<128x16xf32> to vector<1x8x16x16xf32>
    %c0_71 = arith.constant 0 : index
    %c0_72 = arith.constant 0 : index
    %c0_73 = arith.constant 0 : index
    %c0_74 = arith.constant 0 : index
    %76 = vector.load %arg11[%c0_71, %c0_72, %c0_73, %c0_74] : memref<1x8x16x16xf32, #tpu.memory_space<vmem>>, vector<1x8x16x16xf32>
    tpu.vector_store %arg11[%c0_71, %c0_72, %c0_73, %c0_74], %75 {strides = array<i32>} : memref<1x8x16x16xf32, #tpu.memory_space<vmem>>, vector<1x8x16x16xf32>,
    return
  }
  func.func @transform_0(%arg0: i32, %arg1: i32) -> (i32, i32, i32, i32) {
    %c0_i32 = arith.constant 0 : i32
    %c0_i32_0 = arith.constant 0 : i32
    %c0_i32_1 = arith.constant 0 : i32
    return %arg0, %arg1, %c0_i32, %c0_i32_0 : i32, i32, i32, i32
  }
  func.func @transform_1(%arg0: i32, %arg1: i32) -> (i32, i32, i32, i32) {
    %c8_i32 = arith.constant 8 : i32
    %0 = arith.muli %arg1, %c8_i32 : i32
    %c1_i32 = arith.constant 1 : i32
    %1 = arith.subi %0, %c1_i32 : i32
    %c0_i32 = arith.constant 0 : i32
    %2 = arith.maxsi %1, %c0_i32 : i32
    %c0_i32_0 = arith.constant 0 : i32
    %c0_i32_1 = arith.constant 0 : i32
    %c0_i32_2 = arith.constant 0 : i32
    return %arg0, %2, %c0_i32_0, %c0_i32_1 : i32, i32, i32, i32
  }
  func.func @transform_2(%arg0: i32, %arg1: i32) -> (i32, i32, i32, i32) {
    %c1_i32 = arith.constant 1 : i32
    %0 = arith.addi %arg1, %c1_i32 : i32
    %c8_i32 = arith.constant 8 : i32
    %1 = arith.muli %0, %c8_i32 : i32
    %c15_i32 = arith.constant 15 : i32
    %2 = arith.minsi %1, %c15_i32 : i32
    %c0_i32 = arith.constant 0 : i32
    %c0_i32_0 = arith.constant 0 : i32
    %c0_i32_1 = arith.constant 0 : i32
    return %arg0, %2, %c0_i32, %c0_i32_0 : i32, i32, i32, i32
  }
  func.func @transform_3(%arg0: i32, %arg1: i32) -> (i32, i32) {
    %c0_i32 = arith.constant 0 : i32
    %c0_i32_0 = arith.constant 0 : i32
    %c0_i32_1 = arith.constant 0 : i32
    return %c0_i32, %c0_i32_0 : i32, i32
  }
  func.func @transform_4(%arg0: i32, %arg1: i32) -> (i32, i32) {
    %c0_i32 = arith.constant 0 : i32
    %c0_i32_0 = arith.constant 0 : i32
    %c0_i32_1 = arith.constant 0 : i32
    return %c0_i32, %c0_i32_0 : i32, i32
  }
  func.func @transform_5(%arg0: i32, %arg1: i32) -> (i32, i32) {
    %c0_i32 = arith.constant 0 : i32
    %c0_i32_0 = arith.constant 0 : i32
    %c0_i32_1 = arith.constant 0 : i32
    return %c0_i32, %c0_i32_0 : i32, i32
  }
  func.func @transform_6(%arg0: i32, %arg1: i32) -> (i32, i32) {
    %c0_i32 = arith.constant 0 : i32
    %c0_i32_0 = arith.constant 0 : i32
    %c0_i32_1 = arith.constant 0 : i32
    return %c0_i32, %c0_i32_0 : i32, i32
  }
  func.func @transform_7(%arg0: i32, %arg1: i32) -> (i32, i32) {
    %c0_i32 = arith.constant 0 : i32
    %c0_i32_0 = arith.constant 0 : i32
    %c0_i32_1 = arith.constant 0 : i32
    return %c0_i32, %c0_i32_0 : i32, i32
  }
  func.func @transform_8(%arg0: i32, %arg1: i32) -> (i32, i32) {
    %c0_i32 = arith.constant 0 : i32
    %c0_i32_0 = arith.constant 0 : i32
    %c0_i32_1 = arith.constant 0 : i32
    return %c0_i32, %c0_i32_0 : i32, i32
  }
  func.func @transform_9(%arg0: i32, %arg1: i32) -> (i32, i32, i32, i32) {
    %c0_i32 = arith.constant 0 : i32
    %c0_i32_0 = arith.constant 0 : i32
    %c0_i32_1 = arith.constant 0 : i32
    return %arg0, %arg1, %c0_i32, %c0_i32_0 : i32, i32, i32, i32
  }
}

</mosaic_0001>

<bundles_post_ra>
// kernel: tpu_custom_call.1
= control target key start
LH: loop header
LB: loop body
LE: loop exit
PB: predicated region body
PF: predicated region fallthrough
CT: control target
= control target key end

     0   :  { %s3719_s0 = inlined_call_operand.hbm [shape: f32[2,16,16,16], index: 0, kind: input, shape index: {}]   ;;  %s3720_s1 = inlined_call_operand.hbm [shape: f32[2,16,16,16], index: 1, kind: input, shape index: {}]   ;;  %s3721_s2 = inlined_call_operand.hbm [shape: f32[2,16,16,16], index: 2, kind: input, shape index: {}]   ;;  %s3722_s3 = inlined_call_operand.vmem [shape: f32[16,4], index: 3, kind: input, shape index: {}]   ;;  %s3723_s4 = inlined_call_operand.vmem [shape: f32[1,4], index: 4, kind: input, shape index: {}]   ;;  %s3724_s5 = inlined_call_operand.vmem [shape: f32[36,4], index: 5, kind: input, shape index: {}]   ;;  %s3725_s6 = inlined_call_operand.vmem [shape: f32[1,4], index: 6, kind: input, shape index: {}]   ;;  %s3726_s7 = inlined_call_operand.vmem [shape: f32[4,16], index: 7, kind: input, shape index: {}]   ;;  %s3727_s8 = inlined_call_operand.vmem [shape: f32[1,16], index: 8, kind: input, shape index: {}]   ;;  %s3728_s9 = inlined_call_operand.hbm [shape: f32[2,16,16,16], index: 9, kind: output, shape index: {}]  }
   0x1   :  { %3748 = sst [smem:[#allocation27_spill]] %s3719_s0 }
   0x2   :  { %3749 = sst [smem:[#allocation28_spill]] %s3720_s1 }
   0x3   :  { %3750 = sst [smem:[#allocation29_spill]] %s3722_s3 }
   0x4   :  { %3751 = sst [smem:[#allocation30_spill]] %s3723_s4 }
   0x5   :  { %3752 = sst [smem:[#allocation31_spill]] %s3724_s5 }
   0x6   :  { %3753 = sst [smem:[#allocation32_spill]] %s3725_s6 }
   0x7   :  { %3754 = sst [smem:[#allocation33_spill]] %s3726_s7 }
   0x8   :  { %3755 = sst [smem:[#allocation34_spill]] %s3727_s8 }
   0x9   :  { %3756 = sst [smem:[#allocation35_spill]] %s3728_s9 }
   0xa   :  { %14 = vsyncpa [#allocation4], 0 }
   0xb   :  { %16 = vsyncpa [#allocation4 + $0x1], 0 }
   0xc   :  { %17 = vsyncpa [#allocation7], 0 }
   0xd   :  { %19 = vsyncpa [#allocation7 + $0x1], 0 }
   0xe   :  { %20 = vsyncpa [#allocation5], 0 }
   0xf   :  { %22 = vsyncpa [#allocation5 + $0x1], 0  ;;  %s2623_s30 = smov 0   ;;  %s2625_s10 = smov 0  }
  0x10   :  { %s2627_s11 = smov 0   ;;  %s2629_s12 = smov 0  }
  0x11   :  { %s2631_s13 = smov 0   ;;  %s2633_s14 = smov 0  }
  0x12   :  { %s2635_s15 = smov 0   ;;  %s2637_s16 = smov 0  }
  0x13   :  { %s2639_s17 = smov 0   ;;  %s2641_s18 = smov 0  }
  0x14   :  { %s2643_s19 = smov 0   ;;  %s2645_s20 = smov 0  }
  0x15   :  { %s2647_s21 = smov 0   ;;  %s2649_s22 = smov 0  }
  0x16 LB: > { %3757 = sst [smem:[#allocation14_spill]] %s2527_s14  ;;  %s2694_s23 = sadd.s32 4294967295, %s2559_s22   ;;  %s2559_s22 = sphi %s2649_s22, %s28_s22   ;;  %s2555_s21 = sphi %s2647_s21, %s3822_s21   ;;  %s2551_s20 = sphi %s2645_s20, %s3812_s20   ;;  %s2547_s19 = sphi %s2643_s19, %s3811_s19   ;;  %s2543_s18 = sphi %s2641_s18, %s3810_s18   ;;  %s2539_s17 = sphi %s2639_s17, %s3809_s17   ;;  %s2535_s16 = sphi %s2637_s16, %s3821_s16   ;;  %s2531_s15 = sphi %s2635_s15, %s3820_s15   ;;  %s2527_s14 = sphi %s2633_s14, %s3807_s14   ;;  %s2523_s13 = sphi %s2631_s13, %s3819_s13   ;;  %s2519_s12 = sphi %s2629_s12, %s3818_s12   ;;  %s2515_s11 = sphi %s2627_s11, %s3817_s11   ;;  %s2511_s10 = sphi %s2625_s10, %s3816_s10   ;;  %s2507_s30 = sphi %s2623_s30, %s3815_s30  }
  0x17   : > { %3758 = sst [smem:[#allocation15_spill]] %s2531_s15  ;;  %s37_s24 = sadd.s32 1, %s2551_s20 }
  0x18   : > { %3759 = sst [smem:[#allocation16_spill]] %s2539_s17  ;;  %p38_p0 = scmp.ge.s32.totalorder %s37_s24, 2 }
  0x19   : > { %3760 = sst [smem:[#allocation17_spill]] %s2543_s18  ;;  %s40_s25 = sadd.s32 1, %s2555_s21 }
  0x1a   : > { %3761 = sst [smem:[#allocation18_spill]] %s2547_s19  ;;  %p57_p1 = scmp.eq.s32.totalorder %s2559_s22, 0 }
  0x1b   : > { %3762 = sst [smem:[#allocation19_spill]] %s2551_s20  ;;  %p63_p2 = scmp.eq.s32.totalorder %s2694_s23, 0 }
  0x1c   : > { %3763 = sst [smem:[#allocation20_spill]] %s2555_s21  ;;  %s3824_s24 = smov (%p38_p0, %s37_s24), 0 }
  0x1d   : > { %3764 = sst [smem:[#allocation21_spill]] %s3824_s24  ;;  %s3826_s25 = smov (!%p38_p0, %s40_s25), %s2555_s21 }
  0x1e   : > { %s45_s26 = ssub.s32 %s2551_s20, %s3824_s24  ;;  %s2042_s27 = sshll.u32 %s2551_s20, 3 }
  0x1f   : > { %p42_p3 = scmp.ge.s32.totalorder %s3826_s25, 2  ;;  %s2043_s28 = sadd.s32 4294967295, %s2042_s27 }
  0x20   : > { %p74_p4 = scmp.gt.s32.totalorder %s2043_s28, 0  ;;  %s2044_s29 = sshll.u32 %s3824_s24, 3 }
  0x21   : > { %s3828_s25 = smov (%p42_p3, %s3826_s25), 0  ;;  %s2045_s19 = sadd.s32 4294967295, %s2044_s29 }
  0x22   : > { %3765 = sst [smem:[#allocation22_spill]] %s3828_s25  ;;  %s3830_s28 = smov (!%p74_p4, %s2043_s28), 0 }
  0x23   : > { %s2711_s9 = ssub.s32 %s2555_s21, %s3828_s25  ;;  %p78_p5 = scmp.gt.s32.totalorder %s2045_s19, 0 }
  0x24   : > { %s2714_s8 = sor.u32 %s45_s26, %s2711_s9  ;;  %s85_s6 = sadd.s32 1, %s2527_s14 }
  0x25   : > { %p47_p6 = scmp.eq.s32.totalorder %s2714_s8, 0  ;;  %s3832_s19 = smov (!%p78_p5, %s2045_s19), 0 }
  0x26   : > { %p92_p7 = scmp.ne.s32.totalorder %s2527_s14, %s2523_s13  ;;  %p98_p8 = scmp.ne.s32.totalorder %s2523_s13, %s2519_s12 }
  0x27   : > { %s81_s24 = ssub.s32 %s3830_s28, %s3832_s19  ;;  %s2722_s25 = sadd.s32 8, %s2042_s27 }
  0x28   : > { %s82_s7 = sor.u32 %s81_s24, %s2711_s9  ;;  %p2727_p9 = por %p92_p7, %p57_p1 }
  0x29   : > { %p83_p10 = scmp.eq.s32.totalorder %s82_s7, 0  ;;  %p2733_p11 = por %p98_p8, %p63_p2 }
  0x2a   : > { %s2738_s12 = sadd.s32 8, %s2044_s29  ;;  %p3746_p0 = scmp.lt.s32.totalorder %s2559_s22, 4 }
  0x2b   : > { %s3767_s5 = scalar_select %p2733_p11, 1, 0 }
  0x2c   : > { %s2741_s19 = scalar_select %p83_p10, %s2527_s14, %s85_s6  }
  0x2d   : > { %3768 = sst [smem:[#allocation23_spill]] %s3767_s5  ;;  %s2746_s24 = sshll.u32 %s2555_s21, 5 }
  0x2e   : > { %3769 = sst [smem:[#allocation24_spill]] %s2741_s19  ;;  %s355_s7 = sand.u32 1, %s2559_s22  }
  0x2f   : > { %s357_s27 = sand.u32 1, %s2527_s14   ;;  %s2058_s18 = sshll.u32 %s3830_s28, 1 }
  0x30   : > { %s2055_s4 = sshll.u32 %s357_s27, 4  ;;  %s368_s3 = sadd.s32 %s2058_s18, %s2746_s24 }
  0x31   : > { %s359_s5 = scalar_lea.vmem [#allocation6], %s2055_s4  ;;  %s2060_s6 = sshll.u32 %s368_s3, 3 }
  0x32   : > { %s373_s29 = sshll.u32 %s359_s5, 4  ;;  %s3770_s1 = sld [smem:[#allocation28_spill]]  ;;  %s374_s29 = int_to_ptr.vmem [resolvable:$true] %s373_s29 }
  0x33   : > { %p2160_p3 = pnand %p3746_p0, %p2727_p9  ;;  %p2066_p4 = scmp.ge.s32.totalorder %s2559_s22, 1 }
  0x34   : > { %s2759_s4 = scalar_lea.sflag [#allocation7], %s355_s7  ;;  %s3739_s3 = smov 128  }
  0x35   : > { %s3741_s5 = smov 8   ;;  %p409_p5 = scmp.lt.s32.totalorder %s2559_s22, 5 }
  0x36   : > { %s49_s28 = sadd.s32 1, %s2539_s17  ;;  %p56_p8 = scmp.ne.s32.totalorder %s2539_s17, %s2535_s16 }
  0x37   : > { %p2766_p7 = pnand %p2066_p4, %p409_p5  ;;  %p62_p9 = scmp.ne.s32.totalorder %s2535_s16, %s2531_s15 }
  0x38   : > { %s370_s14 = scalar_lea.hbm %s3770_s1, %s2060_s6  ;;  %p286_p10 = scmp.eq.s32.totalorder %s2694_s23, 3 }
  0x39   : > { %s371_s18 = sshll.u32 %s370_s14, 4  ;;  %s2041_s14 = sadd.s32 4294967294, %s2559_s22   ;;  %s372_s18 = int_to_ptr.hbm [resolvable:$true] %s371_s18 }
  0x3a   : > { %2162 = dma.hbm_to_vmem [thread:$0]  (!%p2160_p3), %s372_s18, 256, %s374_s29, %s2759_s4, %s3739_s3, %s3739_s3, %s3741_s5  }
  0x3b   : > { %s2775_s26 = scalar_select %p47_p6, %s2539_s17, %s49_s28  }
  0x3c   : > { %p292_p13 = scmp.eq.s32.totalorder %s2041_s14, 3  ;;  %p2784_p12 = por %p57_p1, %p56_p8 }
  0x3d   : > { %3772 = sst [smem:[#allocation25_spill]] %s2775_s26  ;;  %p2790_p3 = por %p63_p2, %p62_p9 }
  0x3e   : > { %p2794_p4 = por %p286_p10, %p56_p8  ;;  %p2798_p6 = por %p292_p13, %p62_p9 }
  0x3f   : > { %s330_s29 = sand.u32 1, %s2539_s17   ;;  %s2136_s6 = sshll.u32 %s2551_s20, 4 }
  0x40   : > { %s3776_s27 = scalar_select %p2798_p6, 1, 0 }
  0x41   : > { %s2050_s18 = sshll.u32 %s330_s29, 7  ;;  %s340_s14 = sadd.s32 %s2136_s6, %s2746_s24 }
  0x42   : > { %3777 = sst [smem:[#allocation26_spill]] %s3776_s27  ;;  %s2054_s28 = sshll.u32 %s340_s14, 3 }
  0x43   : > { %s334_s3 = scalar_lea.vmem [#allocation3], %s2050_s18  ;;  %s3778_s0 = sld [smem:[#allocation27_spill]] }
  0x44   : > { %s345_s5 = sshll.u32 %s334_s3, 4  ;;  %p2157_p13 = pnand %p3746_p0, %p2784_p12  ;;  %s346_s5 = int_to_ptr.vmem [resolvable:$true] %s345_s5 }
  0x45   : > { %s331_s6 = scalar_lea.sflag [#allocation4], %s330_s29  ;;  %s3779_s20 = smov 8  }
  0x46   : > { %s3780_s14 = smov 128   ;;  %p3781_p5 = scmp.lt.s32.totalorder %s2722_s25, 15 }
  0x47   : > { %p3782_p8 = scmp.lt.s32.totalorder %s2738_s12, 15  ;;  %s121_s1 = sadd.s32 1, %s2515_s11 }
  0x48   : > { %s3834_s25 = smov (!%p3781_p5, %s2722_s25), 15  ;;  %p128_p9 = scmp.ne.s32.totalorder %s2515_s11, %s2511_s10 }
  0x49   : > { %s342_s27 = scalar_lea.hbm %s3778_s0, %s2054_s28  ;;  %s3836_s12 = smov (!%p3782_p8, %s2738_s12), 15 }
  0x4a   : > { %s343_s17 = sshll.u32 %s342_s27, 4  ;;  %s117_s3 = ssub.s32 %s3834_s25, %s3836_s12  ;;  %s344_s17 = int_to_ptr.hbm [resolvable:$true] %s343_s17 }
  0x4b   : > { %2159 = dma.hbm_to_vmem [thread:$0]  (!%p2157_p13), %s344_s17, 2048, %s346_s5, %s331_s6, %s3780_s14, %s3780_s14, %s3779_s20  }
  0x4c   : > { %p134_p10 = scmp.ne.s32.totalorder %s2511_s10, %s2507_s30  ;;  %s118_s26 = sor.u32 %s117_s3, %s2711_s9 }
  0x4d   : > { %p2829_p12 = por %p128_p9, %p57_p1  ;;  %p119_p0 = scmp.eq.s32.totalorder %s118_s26, 0 }
  0x4e   : > { %p2835_p13 = por %p134_p10, %p63_p2  ;;  %s385_s5 = sand.u32 1, %s2515_s11  }
  0x4f   : > { %s2063_s27 = sshll.u32 %s3834_s25, 1  ;;  %s2061_s30 = sshll.u32 %s385_s5, 4 }
  0x50   : > { %s2841_s29 = scalar_select %p119_p0, %s2515_s11, %s121_s1  }
  0x51   : > { %s396_s9 = sadd.s32 %s2063_s27, %s2746_s24  ;;  %s387_s3 = scalar_lea.vmem [#allocation8], %s2061_s30 }
  0x52   : > { %s2065_s12 = sshll.u32 %s396_s9, 3  ;;  %s401_s0 = sshll.u32 %s387_s3, 4  ;;  %s402_s0 = int_to_ptr.vmem [resolvable:$true] %s401_s0 }
  0x53   : > { %s398_s6 = scalar_lea.hbm %s3721_s2, %s2065_s12  ;;  %p3785_p1 = scmp.lt.s32.totalorder %s2559_s22, 4 }
  0x54   : > { %s399_s15 = sshll.u32 %s398_s6, 4  ;;  %413 = sbr.rel (%p2766_p7) target bundleno = 977 (0x3d1), region = 56  ;;  %s400_s15 = int_to_ptr.hbm [resolvable:$true] %s399_s15 }
  0x55   : > { %p2163_p2 = pnand %p3785_p1, %p2829_p12  ;;  %s2858_s25 = sand.u32 (!%p2766_p7), 1, %s2535_s16  }
  0x56   : > { %s2067_s24 = sshll.u32 (!%p2766_p7), %s2858_s25, 7  ;;  %s416_s1 = scalar_lea.sflag (!%p2766_p7), [#allocation4], %s2858_s25 }
  0x57   : > { %2165 = dma.hbm_to_vmem [thread:$0]  (!%p2163_p2), %s400_s15, 256, %s402_s0, %s2759_s4, %s3780_s14, %s3780_s14, %s3779_s20  }
  0x58   : > { %s2864_s26 = scalar_lea.vmem (!%p2766_p7), [#allocation3], %s2067_s24 }
  0x59   : > { %2490 = dma.done.wait (%p2790_p3), %s416_s1, 2048  }
  0x5a   : > { %2492 = vsyncadd (%p2790_p3), %s416_s1, 4294965248  ;;  %s425_s15 = sand.u32 1, %s2694_s23   ;;  %s427_s20 = sand.u32 1, %s2523_s13  }
  0x5b   : > { %s2068_s4 = sshll.u32 %s427_s20, 4  ;;  %s426_s21 = scalar_lea.sflag [#allocation7], %s425_s15 }
  0x5c   : > { %s429_s14 = scalar_lea.vmem [#allocation6], %s2068_s4 }
  0x5d   : > { %2494 = dma.done.wait (%p2733_p11), %s426_s21, 256  }
  0x5e   : > { %2496 = vsyncadd (%p2733_p11), %s426_s21, 4294967040  ;;  %s437_s19 = sand.u32 1, %s2511_s10  }
  0x5f   : > { %s2877_s5 = sshll.u32 %s437_s19, 4 }
  0x60   : > { %s439_s7 = scalar_lea.vmem [#allocation8], %s2877_s5 }
  0x61   : > { %2498 = dma.done.wait (%p2835_p13), %s426_s21, 256  }
  0x62   : > { %2500 = vsyncadd (%p2835_p13), %s426_s21, 4294967040  ;;  %s3787_s30 = sld [smem:[#allocation29_spill]]  ;;  %v498_v2 = vld [vmem:[%s2864_s26] sm:$0xff]  ;;  %vm517_vm0 = vcmask 130048   ;;  %v499_v4 = vld [vmem:[%s2864_s26 + $0x8] sm:$0xff]  ;;  %vm713_vm1 = vcmask 31744  }
  0x63   : > { %v647_v3 = vld [vmem:[%s429_s14] sm:$0xff]  ;;  %v648_v5 = vld [vmem:[%s429_s14 + $0x8] sm:$0xff]  ;;  %v2563_v12 = vmov 0.0   ;;  %s3789_s17 = sld [smem:[#allocation17_spill]]  ;;  %vm716_vm2 = vcmask 25600   ;;  %s2564_s0 = smov 16  }
  0x64   : > { %v500_v6 = vld [vmem:[%s2864_s26 + $0x10] sm:$0xff]  ;;  %v501_v7 = vld [vmem:[%s2864_s26 + $0x18] sm:$0xff]  ;;  %v502_v8 = vld [vmem:[%s2864_s26 + $0x20] sm:$0xff]  ;;  %718 = vst.msk [vmem:[#allocation2 + $0x18] sm:$0xff] %vm713_vm1, %v2563_v12  ;;  %s3790_s1 = sld [smem:[#allocation30_spill]]  ;;  %s2565_s15 = smov 12  }
  0x65   : > { %v503_v9 = vld [vmem:[%s2864_s26 + $0x28] sm:$0xff]  ;;  %v504_v10 = vld [vmem:[%s2864_s26 + $0x30] sm:$0xff]  ;;  %v505_v11 = vld [vmem:[%s2864_s26 + $0x38] sm:$0xff]  ;;  %719 = vst.msk [vmem:[#allocation2 + $0x20] sm:$0xff] %vm713_vm1, %v2563_v12  ;;  %s2566_s20 = smov 4   ;;  %s2567_s4 = smov 20  }
  0x66   : > { %714 = vst.msk [vmem:[#allocation2] sm:$0xff] %vm713_vm1, %v2563_v12  ;;  %v506_v13 = vld [vmem:[%s2864_s26 + $0x40] sm:$0xff]  ;;  %v507_v24 = vld [vmem:[%s2864_s26 + $0x48] sm:$0xff]  ;;  %s2568_s21 = smov 8   ;;  %v508_v50 = vld [vmem:[%s2864_s26 + $0x50] sm:$0xff]  ;;  %s2569_s14 = smov 24  }
  0x67   : > { %715 = vst.msk [vmem:[#allocation2 + $0x8] sm:$0xff] %vm713_vm1, %v2563_v12  ;;  %v509_v56 = vld [vmem:[%s2864_s26 + $0x58] sm:$0xff]  ;;  %s2570_s19 = smov 28   ;;  %v510_v61 = vld [vmem:[%s2864_s26 + $0x60] sm:$0xff]  ;;  %v511_v62 = vld [vmem:[%s2864_s26 + $0x68] sm:$0xff]  ;;  %s2571_s23 = smov 32  }
  0x68   : > { %s3788_s9 = smov %s3787_s30  ;;  %v496_v0 = vld [vmem:[%s3787_s30 + $0x8] sm:$0xff]  ;;  %721 = vst.msk [vmem:[#allocation2 + $0x30] sm:$0xff] %vm713_vm1, %v2563_v12  ;;  %s3793_s12 = sld [smem:[#allocation31_spill]]  ;;  %vm1628_vm4 = vcmask 1043456   ;;  %vm1452_vm5 = vcmask 64512   ;;  %vm1469_vm6 = vcmask 97280  }
  0x69   : > { %v495_v1 = vld [vmem:[%s3788_s9] sm:$0xff]  ;;  %580 = vmatpush.msra.mxu0 %v496_v0  ;;  %669 = vmatpush.msra.mxu1 %v496_v0  ;;  %722 = vst.msk [vmem:[#allocation2 + $0x38] sm:$0xff] %vm713_vm1, %v2563_v12  ;;  %p762_p11 = scmp.gt.s32.totalorder %s3789_s17, 0  ;;  %vm1502_vm7 = vcmask 162816   ;;  %vm1519_vm8 = vcmask 195584   ;;  %vm1536_vm9 = vcmask 228352  }
  0x6a   : > { %2140 = vmatpush.msra.mxu2 %v496_v0  ;;  %724 = vst.msk [vmem:[#allocation2 + $0x48] sm:$0xff] %vm713_vm1, %v2563_v12  ;;  %v2939_v14 = vld [vmem:[%s3790_s1] ss:$0 sm:$0xff]  ;;  %vm1553_vm10 = vcmask 261120   ;;  %vm1579_vm11 = vcmask 293888   ;;  %p770_p0 = scmp.lt.s32.totalorder %s3789_s17, 1 }
  0x6b   : > { %581 = vmatpush.msra.mxu0 %v495_v1  ;;  %670 = vmatpush.msra.mxu1 %v495_v1  ;;  %725 = vst.msk [vmem:[#allocation2 + $0x50] sm:$0xff] %vm713_vm1, %v2563_v12  ;;  %s763_s28 = scalar_select %p762_p11, 1, 0 }
  0x6c   : > { %2071 = vmatmul.msk.f32.vlgmr.msra.gmra.mxu0 %vm517_vm0, %v498_v2  ;;  %2087 = vmatmul.msk.f32.vlgmr.msra.gmra.mxu1 %vm517_vm0, %v647_v3  ;;  %727 = vst.msk [vmem:[#allocation2 + $0x60] sm:$0xff] %vm713_vm1, %v2563_v12  ;;  %s3797_s3 = sld [smem:[#allocation33_spill]] }
  0x6d   : > { %2141 = vmatpush.msra.mxu2 %v495_v1  ;;  %728 = vst.msk [vmem:[#allocation2 + $0x68] sm:$0xff] %vm713_vm1, %v2563_v12  ;;  %v764_v15 = vstv %s763_s28  ;;  %s3801_s18 = sld [smem:[#allocation35_spill]] }
  0x6e   : > { %730 = vst.msk [vmem:[#allocation2 + $0x78] sm:$0xff] %vm713_vm1, %v2563_v12  ;;  %vm2948_vm3 = vcmp.eq.s32.totalorder %v764_v15, 1  ;;  %s3794_s28 = smov %s3793_s12 }
  0x6f   : > { %702 = vmatpush.msrb.mxu2 %v496_v0  ;;  %731 = vst.msk [vmem:[#allocation2 + $0x80] sm:$0xff] %vm713_vm1, %v2563_v12 }
  0x70   : > { %733 = vst.msk [vmem:[#allocation2 + $0x90] sm:$0xff] %vm713_vm1, %v2563_v12 }
  0x71   : > { %703 = vmatpush.msrb.mxu2 %v495_v1  ;;  %734 = vst.msk [vmem:[#allocation2 + $0x98] sm:$0xff] %vm713_vm1, %v2563_v12 }
  0x72   : > { %736 = vst.msk [vmem:[#allocation2 + $0xa8] sm:$0xff] %vm713_vm1, %v2563_v12 }
  0x73   : > { %737 = vst.msk [vmem:[#allocation2 + $0xb0] sm:$0xff] %vm713_vm1, %v2563_v12  ;;  %s3802_s6 = smov %s3801_s18 }
  0x74   : > { %2072 = vmatmul.msk.f32.gmra.mxu0 %vm517_vm0, %v499_v4  ;;  %2088 = vmatmul.msk.f32.gmra.mxu1 %vm517_vm0, %v648_v5  ;;  %739 = vst.msk [vmem:[#allocation2 + $0xc0] sm:$0xff] %vm713_vm1, %v2563_v12 }
  0x75   : > { %740 = vst.msk [vmem:[#allocation2 + $0xc8] sm:$0xff] %vm713_vm1, %v2563_v12 }
  0x76   : > { %742 = vst.msk [vmem:[#allocation2 + $0xd8] sm:$0xff] %vm713_vm1, %v2563_v12 }
  0x77   : > { %743 = vst.msk [vmem:[#allocation2 + $0xe0] sm:$0xff] %vm713_vm1, %v2563_v12 }
  0x78   : > { %720 = vst.msk [vmem:[#allocation2 + $0x28] sm:$0x3] %vm716_vm2, %v2563_v12 }
  0x79   : > { %717 = vst.msk [vmem:[#allocation2 + $0x10] sm:$0x3] %vm716_vm2, %v2563_v12 }
  0x7a   : > { %723 = vst.msk [vmem:[#allocation2 + $0x40] sm:$0x3] %vm716_vm2, %v2563_v12 }
  0x7b   : > { %726 = vst.msk [vmem:[#allocation2 + $0x58] sm:$0x3] %vm716_vm2, %v2563_v12 }
  0x7c   : > { %2073 = vmatmul.msk.f32.gmra.mxu0 %vm517_vm0, %v500_v6  ;;  %729 = vst.msk [vmem:[#allocation2 + $0x70] sm:$0x3] %vm716_vm2, %v2563_v12 }
  0x7d   : > { %732 = vst.msk [vmem:[#allocation2 + $0x88] sm:$0x3] %vm716_vm2, %v2563_v12 }
  0x7e   : > { %735 = vst.msk [vmem:[#allocation2 + $0xa0] sm:$0x3] %vm716_vm2, %v2563_v12 }
  0x7f   : > { %738 = vst.msk [vmem:[#allocation2 + $0xb8] sm:$0x3] %vm716_vm2, %v2563_v12 }
  0x80   : > { %741 = vst.msk [vmem:[#allocation2 + $0xd0] sm:$0x3] %vm716_vm2, %v2563_v12 }
  0x81   : > { %744 = vst.msk [vmem:[#allocation2 + $0xe8] sm:$0x3] %vm716_vm2, %v2563_v12 }
  0x84   : > { %2074 = vmatmul.msk.f32.gmra.mxu0 %vm517_vm0, %v501_v7 }
  0x8c   : > { %2075 = vmatmul.msk.f32.gmra.mxu0 %vm517_vm0, %v502_v8  ;;  %v512_v8 = vld [vmem:[%s2864_s26 + $0x70] sm:$0xff] }
  0x8d   : > { %2085 = vmatmul.msk.f32.vlgmr.msra.gmra.mxu2 %vm517_vm0, %v512_v8 }
  0x94   : > { %2076 = vmatmul.msk.f32.gmra.mxu0 %vm517_vm0, %v503_v9 }
  0x9c   : > { %2077 = vmatmul.msk.f32.gmra.mxu0 %vm517_vm0, %v504_v10  ;;  %v513_v10 = vld [vmem:[%s2864_s26 + $0x78] sm:$0xff] }
  0x9d   : > { %2086 = vmatmul.msk.f32.gmra.mxu2 %vm517_vm0, %v513_v10 }
  0xa4   : > { %2078 = vmatmul.msk.f32.gmra.mxu0 %vm517_vm0, %v505_v11 }
  0xac   : > { %2079 = vmatmul.msk.f32.gmra.mxu0 %vm517_vm0, %v506_v13 }
  0xb4   : > { %2080 = vmatmul.msk.f32.gmra.mxu0 %vm517_vm0, %v507_v24  ;;  %v680_v24 = vld [vmem:[%s439_s7] sm:$0xff] }
  0xb5   : > { %2089 = vmatmul.msk.f32.vlgmr.msrb.gmra.mxu2 %vm517_vm0, %v680_v24 }
  0xbc   : > { %2081 = vmatmul.msk.f32.gmra.mxu0 %vm517_vm0, %v508_v50 }
  0xc4   : > { %2082 = vmatmul.msk.f32.gmra.mxu0 %vm517_vm0, %v509_v56 }
  0xcc   : > { %2083 = vmatmul.msk.f32.gmra.mxu0 %vm517_vm0, %v510_v61 }
  0xd4   : > { %2084 = vmatmul.msk.f32.gmra.mxu0 %vm517_vm0, %v511_v62 }
  0xe9   : > { %v583_v16 = vpop.f32.mrf.mxu0  ;;  %v672_v17 = vpop.f32.mrf.mxu1 }
  0xea   : > { %v584_v18 = vadd.f32 %v2939_v14, %v583_v16  ;;  %v673_v19 = vadd.f32 %v2939_v14, %v672_v17 }
  0xec   : > { %v631_v21 = vmax.f32 %v584_v18, 0.0  ;;  %v678_v22 = vmax.f32 %v673_v19, 0.0 }
  0xee   : > { %746 = vst.msk [vmem:[#allocation2 + $0x19] sm:$0xff] %vm713_vm1, %v631_v21  ;;  %v766_v23 = vsel %vm2948_vm3, %v678_v22, 0.0 }
  0xef   : > { %768 = vst.msk [vmem:[#allocation2 + $0x1] sm:$0xff] %vm713_vm1, %v766_v23 }
  0xf1   : > { %v586_v25 = vpop.f32.mrf.mxu0  ;;  %v675_v26 = vpop.f32.mrf.mxu1 }
  0xf2   : > { %v587_v27 = vadd.f32 %v2939_v14, %v586_v25  ;;  %v676_v28 = vadd.f32 %v2939_v14, %v675_v26 }
  0xf4   : > { %v632_v29 = vmax.f32 %v587_v27, 0.0  ;;  %v679_v30 = vmax.f32 %v676_v28, 0.0 }
  0xf5   : > { %v843_v31 = vld [vmem:[#allocation2 + $0x19] sm:$0xff] }
  0xf6   : > { %v2960_v32 = vld [vmem:[#allocation2 + $0x18] sm:$0xff]  ;;  %747 = vst.msk [vmem:[#allocation2 + $0x21] sm:$0xff] %vm713_vm1, %v632_v29  ;;  %1132 = vrot.lane.b32.xlu0 %v843_v31, %s2564_s0  ;;  %v795_v33 = vld [vmem:[#allocation2 + $0x1] sm:$0xff]  ;;  %v767_v34 = vsel %vm2948_vm3, %v679_v30, 0.0 }
  0xf7   : > { %1068 = vrot.lane.b32.xlu1 %v2960_v32, %s2565_s15  ;;  %940 = vrot.lane.b32.xlu2 %v795_v33, %s2566_s20  ;;  %769 = vst.msk [vmem:[#allocation2 + $0x9] sm:$0xff] %vm713_vm1, %v767_v34  ;;  %v1574_v30 = vld [vmem:[%s3793_s12 + $0x20] sm:$0xf]  ;;  %v681_v33 = vld [vmem:[%s439_s7 + $0x8] sm:$0xff]  ;;  %s771_s12 = scalar_select %p770_p0, 1, 0 }
  0xf8   : > { %2091 = vmatpush.msk.msra.mxu2 %vm1628_vm4, %v1574_v30  ;;  %v1573_v34 = vld [vmem:[%s3794_s28 + $0x18] sm:$0xff]  ;;  %2142 = vmatpush.msk.msra.mxu3 %vm1628_vm4, %v1574_v30  ;;  %s3798_s7 = sld [smem:[#allocation32_spill]] }
  0xf9   : > { %v589_v35 = vpop.f32.mrf.mxu0  ;;  %2090 = vmatmul.msk.f32.gmra.mxu2 %vm517_vm0, %v681_v33 }
  0xfa   : > { %v590_v36 = vadd.f32 %v2939_v14, %v589_v35  ;;  %v1572_v35 = vld [vmem:[%s3794_s28 + $0x10] sm:$0xff]  ;;  %1644 = vmatpush.msra.mxu2 %v1573_v34  ;;  %2143 = vmatpush.msra.mxu3 %v1573_v34 }
  0xfc   : > { %v633_v37 = vmax.f32 %v590_v36, 0.0  ;;  %1645 = vmatpush.msra.mxu2 %v1572_v35  ;;  %2144 = vmatpush.msra.mxu3 %v1572_v35 }
  0xfd   : > { %v798_v38 = vld [vmem:[#allocation2 + $0x21] sm:$0xff] }
  0xfe   : > { %v859_v39 = vld [vmem:[#allocation2 + $0x1a] sm:$0xff]  ;;  %946 = vrot.lane.b32.xlu0 %v798_v38, %s2566_s20  ;;  %748 = vst.msk [vmem:[#allocation2 + $0x31] sm:$0xff] %vm713_vm1, %v633_v37  ;;  %v814_v43 = vld [vmem:[#allocation2 + $0x22] sm:$0xff]  ;;  %v812_v47 = vld [vmem:[#allocation2 + $0xa] sm:$0xff] }
  0xff   : > { %944 = vrot.lane.b32.xlu1 %v843_v31, %s2566_s20  ;;  %1196 = vrot.lane.b32.xlu2 %v859_v39, %s2567_s4  ;;  %v2978_v44 = vld [vmem:[#allocation2 + $0x20] sm:$0xff]  ;;  %v796_v57 = vld [vmem:[#allocation2 + $0x9] sm:$0xff] }
 0x100   : > { %v811_v49 = vld [vmem:[#allocation2 + $0x2] sm:$0xff] }
 0x101   : > { %v592_v40 = vpop.f32.mrf.mxu0 }
 0x102   : > { %v593_v41 = vadd.f32 %v2939_v14, %v592_v40 }
 0x104   : > { %v634_v42 = vmax.f32 %v593_v41, 0.0 }
 0x105   : > { %v2991_v53 = vld [vmem:[#allocation2 + $0x30] sm:$0xff] }
 0x106   : > { %1010 = vrot.lane.b32.xlu0 %v814_v43, %s2568_s21  ;;  %749 = vst.msk [vmem:[#allocation2 + $0x39] sm:$0xff] %vm713_vm1, %v634_v42  ;;  %v799_v54 = vld [vmem:[#allocation2 + $0x31] sm:$0xff] }
 0x107   : > { %1134 = vrot.lane.b32.xlu1 %v798_v38, %s2564_s0  ;;  %1070 = vrot.lane.b32.xlu2 %v2978_v44, %s2565_s15 }
 0x109   : > { %v595_v45 = vpop.f32.mrf.mxu0 }
 0x10a   : > { %v596_v46 = vadd.f32 %v2939_v14, %v595_v45 }
 0x10c   : > { %v635_v48 = vmax.f32 %v596_v46, 0.0  ;;  %v1570_v46 = vld [vmem:[%s3794_s28] sm:$0xff] }
 0x10d   : > { %v3000_v58 = vld [vmem:[#allocation2 + $0x38] sm:$0xff] }
 0x10e   : > { %1198 = vrot.lane.b32.xlu0 %v814_v43, %s2567_s4  ;;  %750 = vst.msk [vmem:[#allocation2 + $0x49] sm:$0xff] %vm713_vm1, %v635_v48  ;;  %v846_v59 = vld [vmem:[#allocation2 + $0x39] sm:$0xff] }
 0x10f   : > { %1004 = vrot.lane.b32.xlu1 %v811_v49, %s2568_s21  ;;  %1006 = vrot.lane.b32.xlu2 %v812_v47, %s2568_s21  ;;  %v862_v60 = vld [vmem:[#allocation2 + $0x3a] sm:$0xff]  ;;  %v815_v63 = vld [vmem:[#allocation2 + $0x32] sm:$0xff] }
 0x111   : > { %v598_v51 = vpop.f32.mrf.mxu0 }
 0x112   : > { %v599_v52 = vadd.f32 %v2939_v14, %v598_v51 }
 0x114   : > { %v636_v55 = vmax.f32 %v599_v52, 0.0 }
 0x115   : > { %v3021_v2 = vld [vmem:[#allocation2 + $0x48] sm:$0xff] }
 0x116   : > { %1008 = vrot.lane.b32.xlu0 %v859_v39, %s2568_s21  ;;  %751 = vst.msk [vmem:[#allocation2 + $0x51] sm:$0xff] %vm713_vm1, %v636_v55  ;;  %v801_v7 = vld [vmem:[#allocation2 + $0x49] sm:$0xff] }
 0x117   : > { %1260 = vrot.lane.b32.xlu1 %v2991_v53, %s2569_s14  ;;  %948 = vrot.lane.b32.xlu2 %v799_v54, %s2566_s20  ;;  %v1571_v39 = vld [vmem:[%s3794_s28 + $0x8] sm:$0xff] }
 0x118   : > { %1646 = vmatpush.msra.mxu2 %v1571_v39  ;;  %2145 = vmatpush.msra.mxu3 %v1571_v39 }
 0x119   : > { %v601_v0 = vpop.f32.mrf.mxu0 }
 0x11a   : > { %v602_v1 = vadd.f32 %v2939_v14, %v601_v0  ;;  %1647 = vmatpush.msra.mxu2 %v1570_v46  ;;  %2146 = vmatpush.msra.mxu3 %v1570_v46 }
 0x11c   : > { %v637_v3 = vmax.f32 %v602_v1, 0.0 }
 0x11d   : > { %v911_v9 = vld [vmem:[#allocation2 + $0x52] sm:$0xff]  ;;  %v863_v16 = vld [vmem:[#allocation2 + $0x4a] sm:$0xff] }
 0x11e   : > { %942 = vrot.lane.b32.xlu0 %v796_v57, %s2566_s20  ;;  %752 = vst.msk [vmem:[#allocation2 + $0x61] sm:$0xff] %vm713_vm1, %v637_v3  ;;  %v895_v12 = vld [vmem:[#allocation2 + $0x51] sm:$0xff] }
 0x11f   : > { %1074 = vrot.lane.b32.xlu1 %v3000_v58, %s2565_s15  ;;  %1136 = vrot.lane.b32.xlu2 %v799_v54, %s2564_s0  ;;  %v3044_v13 = vld [vmem:[#allocation2 + $0x50] sm:$0xff] }
 0x121   : > { %v604_v4 = vpop.f32.mrf.mxu0 }
 0x122   : > { %v605_v5 = vadd.f32 %v2939_v14, %v604_v4 }
 0x124   : > { %v638_v6 = vmax.f32 %v605_v5, 0.0 }
 0x125   : > { %v3072_v25 = vld [vmem:[#allocation2 + $0x60] sm:$0xff] }
 0x126   : > { %1324 = vrot.lane.b32.xlu0 %v799_v54, %s2570_s19  ;;  %753 = vst.msk [vmem:[#allocation2 + $0x69] sm:$0xff] %vm713_vm1, %v638_v6  ;;  %v896_v36 = vld [vmem:[#allocation2 + $0x61] sm:$0xff] }
 0x127   : > { %1138 = vrot.lane.b32.xlu1 %v846_v59, %s2564_s0  ;;  %1202 = vrot.lane.b32.xlu2 %v862_v60, %s2567_s4 }
 0x129   : > { %v607_v18 = vpop.f32.mrf.mxu0 }
 0x12a   : > { %v608_v19 = vadd.f32 %v2939_v14, %v607_v18 }
 0x12c   : > { %v639_v20 = vmax.f32 %v608_v19, 0.0 }
 0x12d   : > { %v912_v38 = vld [vmem:[#allocation2 + $0x62] sm:$0xff]  ;;  %v913_v47 = vld [vmem:[#allocation2 + $0x6a] sm:$0xff] }
 0x12e   : > { %1072 = vrot.lane.b32.xlu0 %v2991_v53, %s2565_s15  ;;  %754 = vst.msk [vmem:[#allocation2 + $0x79] sm:$0xff] %vm713_vm1, %v639_v20  ;;  %v850_v48 = vld [vmem:[#allocation2 + $0x69] sm:$0xff] }
 0x12f   : > { %1326 = vrot.lane.b32.xlu1 %v846_v59, %s2570_s19  ;;  %1014 = vrot.lane.b32.xlu2 %v862_v60, %s2568_s21  ;;  %v3122_v51 = vld [vmem:[#allocation2 + $0x68] sm:$0xff] }
 0x131   : > { %v610_v29 = vpop.f32.mrf.mxu0 }
 0x132   : > { %v611_v31 = vadd.f32 %v2939_v14, %v610_v29 }
 0x134   : > { %v640_v37 = vmax.f32 %v611_v31, 0.0 }
 0x135   : > { %v898_v10 = vld [vmem:[#allocation2 + $0x79] sm:$0xff] }
 0x136   : > { %1012 = vrot.lane.b32.xlu0 %v815_v63, %s2568_s21  ;;  %755 = vst.msk [vmem:[#allocation2 + $0x81] sm:$0xff] %vm713_vm1, %v640_v37 }
 0x137   : > { %1200 = vrot.lane.b32.xlu1 %v815_v63, %s2567_s4  ;;  %1388 = vrot.lane.b32.xlu2 %v815_v63, %s2571_s23 }
 0x139   : > { %v613_v5 = vpop.f32.mrf.mxu0 }
 0x13d   : > { %v899_v31 = vld [vmem:[#allocation2 + $0x81] sm:$0xff] }
 0x13e   : > { %950 = vrot.lane.b32.xlu0 %v846_v59, %s2566_s20  ;;  %v779_v59 = vld [vmem:[#allocation2] sm:$0xff] }
 0x13f   : > { %1076 = vrot.lane.b32.xlu1 %v3021_v2, %s2565_s15  ;;  %1262 = vrot.lane.b32.xlu2 %v3000_v58, %s2569_s14  ;;  %v3180_v33 = vld [vmem:[#allocation2 + $0x80] sm:$0xff] }
 0x146   : > { %1390 = vrot.lane.b32.xlu0 %v862_v60, %s2571_s23  ;;  %v3133_v60 = vld [vmem:[#allocation2 + $0x78] sm:$0xff] }
 0x147   : > { %952 = vrot.lane.b32.xlu1 %v801_v7, %s2566_s20  ;;  %1140 = vrot.lane.b32.xlu2 %v801_v7, %s2564_s0 }
 0x14e   : > { %1264 = vrot.lane.b32.xlu0 %v3021_v2, %s2569_s14 }
 0x14f   : > { %1394 = vrot.lane.b32.xlu1 %v911_v9, %s2571_s23  ;;  %1328 = vrot.lane.b32.xlu2 %v801_v7, %s2570_s19  ;;  %v614_v7 = vadd.f32 %v2939_v14, %v613_v5 }
 0x151   : > { %v3042_v11 = vpop.permute.xlu2 %940 }
 0x152   : > { %v1436_v61 = vsel %vm713_vm1, %v779_v59, %v3042_v11  ;;  %v641_v11 = vmax.f32 %v614_v7, 0.0 }
 0x154   : > { %756 = vst.msk [vmem:[#allocation2 + $0x91] sm:$0xff] %vm713_vm1, %v641_v11 }
 0x156   : > { %1330 = vrot.lane.b32.xlu0 %v895_v12, %s2570_s19 }
 0x157   : > { %1078 = vrot.lane.b32.xlu1 %v3044_v13, %s2565_s15  ;;  %1266 = vrot.lane.b32.xlu2 %v3044_v13, %s2569_s14 }
 0x159   : > { %v3051_v15 = vpop.permute.xlu2 %1196 }
 0x15b   : > { %v3229_v5 = vld [vmem:[#allocation2 + $0x91] sm:$0xff] }
 0x15e   : > { %1204 = vrot.lane.b32.xlu0 %v863_v16, %s2567_s4 }
 0x15f   : > { %1018 = vrot.lane.b32.xlu1 %v911_v9, %s2568_s21  ;;  %1206 = vrot.lane.b32.xlu2 %v911_v9, %s2567_s4 }
 0x161   : > { %v3056_v17 = vpop.permute.xlu2 %1070 }
 0x166   : > { %1142 = vrot.lane.b32.xlu0 %v895_v12, %s2564_s0 }
 0x167   : > { %1392 = vrot.lane.b32.xlu1 %v863_v16, %s2571_s23  ;;  %954 = vrot.lane.b32.xlu2 %v895_v12, %s2566_s20 }
 0x168   : > { %v3063_v21 = vpop.permute.xlu0 %1132 }
 0x169   : > { %v3065_v22 = vpop.permute.xlu1 %1068  ;;  %v3067_v23 = vpop.permute.xlu2 %1006 }
 0x16e   : > { %1016 = vrot.lane.b32.xlu0 %v863_v16, %s2568_s21 }
 0x16f   : > { %1268 = vrot.lane.b32.xlu1 %v3072_v25, %s2569_s14  ;;  %1080 = vrot.lane.b32.xlu2 %v3072_v25, %s2565_s15 }
 0x170   : > { %v947_v26 = vpop.permute.xlu0 %946 }
 0x171   : > { %v945_v27 = vpop.permute.xlu1 %944  ;;  %v3079_v28 = vpop.permute.xlu2 %948  ;;  %v1439_v40 = vsel %vm713_vm1, %v2978_v44, %v947_v26 }
 0x172   : > { %v1438_v52 = vsel %vm713_vm1, %v2960_v32, %v945_v27  ;;  %v780_v32 = vld [vmem:[#allocation2 + $0x8] sm:$0xff] }
 0x176   : > { %1332 = vrot.lane.b32.xlu0 %v896_v36, %s2570_s19 }
 0x177   : > { %1144 = vrot.lane.b32.xlu1 %v896_v36, %s2564_s0  ;;  %1396 = vrot.lane.b32.xlu2 %v912_v38, %s2571_s23 }
 0x178   : > { %v1011_v41 = vpop.permute.xlu0 %1010 }
 0x179   : > { %v3105_v42 = vpop.permute.xlu1 %1134  ;;  %v3108_v43 = vsel %vm1452_vm5, %v1439_v40, %v1011_v41  ;;  %v3110_v45 = vpop.permute.xlu2 %1136  ;;  %v915_v40 = vld [vmem:[#allocation2 + $0x82] sm:$0xff]  ;;  %v914_v41 = vld [vmem:[#allocation2 + $0x7a] sm:$0xff] }
 0x17e   : > { %1398 = vrot.lane.b32.xlu0 %v913_v47, %s2571_s23 }
 0x17f   : > { %956 = vrot.lane.b32.xlu1 %v896_v36, %s2566_s20  ;;  %1146 = vrot.lane.b32.xlu2 %v850_v48, %s2564_s0 }
 0x180   : > { %v3118_v44 = vpop.permute.xlu0 %1198 }
 0x181   : > { %v1005_v49 = vpop.permute.xlu1 %1004  ;;  %v3120_v50 = vpop.permute.xlu2 %1202 }
 0x182   : > { %v1453_v62 = vsel %vm1452_vm5, %v1436_v61, %v1005_v49 }
 0x183   : > { %v1470_v1 = vsel %vm1469_vm6, %v1453_v62, %v3065_v22 }
 0x184   : > { %v1486_v9 = vsel %vm517_vm0, %v1470_v1, %v3063_v21  ;;  %v616_v21 = vpop.f32.mrf.mxu0 }
 0x185   : > { %v1503_v12 = vsel %vm1502_vm7, %v1486_v9, %v3051_v15 }
 0x186   : > { %1208 = vrot.lane.b32.xlu0 %v912_v38, %s2567_s4 }
 0x187   : > { %1270 = vrot.lane.b32.xlu1 %v3122_v51, %s2569_s14  ;;  %1020 = vrot.lane.b32.xlu2 %v912_v38, %s2568_s21 }
 0x188   : > { %v1009_v54 = vpop.permute.xlu0 %1008 }
 0x189   : > { %v1261_v55 = vpop.permute.xlu1 %1260  ;;  %v1455_v56 = vsel %vm1452_vm5, %v1438_v52, %v1009_v54  ;;  %v3131_v57 = vpop.permute.xlu2 %1014 }
 0x18a   : > { %v1520_v16 = vsel %vm1519_vm8, %v1503_v12, %v1261_v55  ;;  %v625_v12 = vpop.f32.mrf.mxu2 }
 0x18c   : > { %v619_v37 = vpop.f32.mrf.mxu0 }
 0x18d   : > { %v620_v38 = vadd.f32 %v2939_v14, %v619_v37 }
 0x18e   : > { %1082 = vrot.lane.b32.xlu0 %v3122_v51, %s2565_s15 }
 0x18f   : > { %1334 = vrot.lane.b32.xlu1 %v850_v48, %s2570_s19  ;;  %1272 = vrot.lane.b32.xlu2 %v3133_v60, %s2569_s14  ;;  %v643_v39 = vmax.f32 %v620_v38, 0.0 }
 0x190   : > { %v943_v63 = vpop.permute.xlu0 %942 }
 0x191   : > { %v3143_v0 = vpop.permute.xlu1 %1074  ;;  %v1437_v3 = vsel %vm713_vm1, %v780_v32, %v943_v63  ;;  %v1389_v4 = vpop.permute.xlu2 %1388  ;;  %758 = vst.msk [vmem:[#allocation2 + $0xa9] sm:$0xff] %vm713_vm1, %v643_v39 }
 0x192   : > { %v1454_v6 = vsel %vm1452_vm5, %v1437_v3, %v3067_v23  ;;  %v617_v23 = vadd.f32 %v2939_v14, %v616_v21  ;;  %v1473_v3 = vsel %vm1469_vm6, %v3108_v43, %v3143_v0 }
 0x193   : > { %v1471_v8 = vsel %vm1469_vm6, %v1454_v6, %v3056_v17 }
 0x194   : > { %v642_v15 = vmax.f32 %v617_v23, 0.0  ;;  %v622_v49 = vpop.f32.mrf.mxu0  ;;  %v1487_v55 = vsel %vm517_vm0, %v1471_v8, %v3105_v42 }
 0x195   : > { %v623_v54 = vadd.f32 %v2939_v14, %v622_v49  ;;  %v1504_v59 = vsel %vm1502_vm7, %v1487_v55, %v3118_v44 }
 0x196   : > { %958 = vrot.lane.b32.xlu0 %v850_v48, %s2566_s20  ;;  %757 = vst.msk [vmem:[#allocation2 + $0x99] sm:$0xff] %vm713_vm1, %v642_v15  ;;  %v628_v15 = vpop.f32.mrf.mxu2 }
 0x197   : > { %1210 = vrot.lane.b32.xlu1 %v913_v47, %s2567_s4  ;;  %1336 = vrot.lane.b32.xlu2 %v898_v10, %s2570_s19 }
 0x198   : > { %v1325_v17 = vpop.permute.xlu0 %1324 }
 0x199   : > { %v3162_v18 = vpop.permute.xlu1 %1138  ;;  %v1537_v19 = vsel %vm1536_vm9, %v1520_v16, %v1325_v17  ;;  %v1263_v20 = vpop.permute.xlu2 %1262 }
 0x19a   : > { %v1554_v22 = vsel %vm1553_vm10, %v1537_v19, %v1389_v4  ;;  %v3227_v4 = vld [vmem:[#allocation2 + $0x90] sm:$0xff]  ;;  %v1489_v6 = vsel %vm517_vm0, %v1473_v3, %v3162_v18 }
 0x19b   : > { %2092 = vmatmul.msk.f32.vlgmr.msra.gmra.mxu2 %vm1579_vm11, %v1554_v22  ;;  %v1506_v7 = vsel %vm1502_vm7, %v1489_v6, %v3120_v50  ;;  %v626_v50 = vadd.f32 %v2939_v14, %v625_v12 }
 0x19d   : > { %v3247_v16 = vld [vmem:[#allocation2 + $0x99] sm:$0xff]  ;;  %v645_v17 = vmax.f32 %v626_v50, 0.0 }
 0x19e   : > { %1084 = vrot.lane.b32.xlu0 %v3133_v60, %s2565_s15  ;;  %v3254_v18 = vld [vmem:[#allocation2 + $0x92] sm:$0xff] }
 0x19f   : > { %1022 = vrot.lane.b32.xlu1 %v913_v47, %s2568_s21  ;;  %960 = vrot.lane.b32.xlu2 %v898_v10, %s2566_s20  ;;  %760 = vst.msk [vmem:[#allocation2 + $0xc1] sm:$0xff] %vm713_vm1, %v645_v17 }
 0x1a0   : > { %v1073_v24 = vpop.permute.xlu0 %1072 }
 0x1a1   : > { %v1327_v26 = vpop.permute.xlu1 %1326  ;;  %v1472_v27 = vsel %vm1469_vm6, %v1455_v56, %v1073_v24  ;;  %v3174_v29 = vpop.permute.xlu2 %1140  ;;  %v644_v56 = vmax.f32 %v623_v54, 0.0  ;;  %v629_v24 = vadd.f32 %v2939_v14, %v628_v15 }
 0x1a2   : > { %v3178_v30 = vsel %vm517_vm0, %v1472_v27, %v3110_v45 }
 0x1a3   : > { %759 = vst.msk [vmem:[#allocation2 + $0xb1] sm:$0xff] %vm713_vm1, %v644_v56  ;;  %v646_v37 = vmax.f32 %v629_v24, 0.0 }
 0x1a5   : > { %761 = vst.msk [vmem:[#allocation2 + $0xc9] sm:$0xff] %vm713_vm1, %v646_v37 }
 0x1a6   : > { %1274 = vrot.lane.b32.xlu0 %v3180_v33, %s2569_s14  ;;  %v888_v24 = vld [vmem:[#allocation2 + $0xc0] sm:$0xff] }
 0x1a7   : > { %1148 = vrot.lane.b32.xlu1 %v898_v10, %s2564_s0  ;;  %1338 = vrot.lane.b32.xlu2 %v899_v31, %s2570_s19 }
 0x1a8   : > { %v3186_v34 = vpop.permute.xlu0 %1012 }
 0x1a9   : > { %v3188_v35 = vpop.permute.xlu1 %1200  ;;  %v3190_v36 = vpop.permute.xlu2 %1328 }
 0x1aa   : > { %v3339_v3 = vld [vmem:[#allocation2 + $0xb2] sm:$0xff] }
 0x1ae   : > { %1402 = vrot.lane.b32.xlu0 %v915_v40, %s2571_s23 }
 0x1af   : > { %1400 = vrot.lane.b32.xlu1 %v914_v41, %s2571_s23  ;;  %1212 = vrot.lane.b32.xlu2 %v914_v41, %s2567_s4 }
 0x1b0   : > { %v951_v45 = vpop.permute.xlu0 %950 }
 0x1b1   : > { %v3197_v46 = vpop.permute.xlu1 %1076  ;;  %v1441_v47 = vsel %vm713_vm1, %v3000_v58, %v951_v45  ;;  %v1267_v48 = vpop.permute.xlu2 %1266  ;;  %v1521_v58 = vsel %vm1519_vm8, %v1504_v59, %v1263_v20  ;;  %v3310_v59 = vld [vmem:[#allocation2 + $0xa8] sm:$0xff] }
 0x1b2   : > { %v3203_v52 = vsel %vm1452_vm5, %v1441_v47, %v3131_v57  ;;  %v1538_v57 = vsel %vm1536_vm9, %v1521_v58, %v1327_v26  ;;  %v1523_v43 = vsel %vm1519_vm8, %v1506_v7, %v1267_v48  ;;  %v1505_v26 = vsel %vm1502_vm7, %v3178_v30, %v3188_v35 }
 0x1b3   : > { %v1440_v47 = vsel %vm713_vm1, %v2991_v53, %v3079_v28  ;;  %v3318_v28 = vld [vmem:[#allocation2 + $0xa9] sm:$0xff] }
 0x1b4   : > { %v1457_v54 = vsel %vm1452_vm5, %v1440_v47, %v3186_v34 }
 0x1b5   : > { %v1474_v56 = vsel %vm1469_vm6, %v1457_v54, %v3197_v46 }
 0x1b6   : > { %1150 = vrot.lane.b32.xlu0 %v899_v31, %s2564_s0  ;;  %v1490_v53 = vsel %vm517_vm0, %v1474_v56, %v3174_v29 }
 0x1b7   : > { %1214 = vrot.lane.b32.xlu1 %v915_v40, %s2567_s4  ;;  %1086 = vrot.lane.b32.xlu2 %v3180_v33, %s2565_s15 }
 0x1b8   : > { %v1391_v61 = vpop.permute.xlu0 %1390 }
 0x1b9   : > { %v953_v62 = vpop.permute.xlu1 %952  ;;  %v3217_v42 = vpop.permute.xlu2 %1206  ;;  %v1555_v32 = vsel %vm1553_vm10, %v1538_v57, %v1391_v61 }
 0x1ba   : > { %2093 = vmatmul.msk.f32.gmra.mxu2 %vm1579_vm11, %v1555_v32  ;;  %v772_v32 = vstv %s771_s12 }
 0x1bb   : > { %vm3344_vm12 = vcmp.eq.s32.totalorder %v772_v32, 1 }
 0x1be   : > { %1024 = vrot.lane.b32.xlu0 %v914_v41, %s2568_s21  ;;  %v1442_v41 = vsel %vm713_vm1, %v3021_v2, %v953_v62  ;;  %v3308_v2 = vld [vmem:[#allocation2 + $0xaa] sm:$0xff] }
 0x1bf   : > { %962 = vrot.lane.b32.xlu1 %v899_v31, %s2566_s20  ;;  %1026 = vrot.lane.b32.xlu2 %v915_v40, %s2568_s21  ;;  %v3269_v31 = vld [vmem:[#allocation2 + $0x9a] sm:$0xff] }
 0x1c0   : > { %v1265_v44 = vpop.permute.xlu0 %1264 }
 0x1c1   : > { %v1395_v63 = vpop.permute.xlu1 %1394  ;;  %v955_v1 = vpop.permute.xlu2 %954  ;;  %v1522_v27 = vsel %vm1519_vm8, %v1505_v26, %v1265_v44  ;;  %v3331_v44 = vld [vmem:[#allocation2 + $0xb0] sm:$0xff] }
 0x1c2   : > { %v1443_v19 = vsel %vm713_vm1, %v3044_v13, %v955_v1  ;;  %v3275_v13 = vld [vmem:[#allocation2 + $0x98] sm:$0xff]  ;;  %v1539_v35 = vsel %vm1536_vm9, %v1522_v27, %v3190_v36  ;;  %v705_v1 = vpop.f32.mrf.mxu2 }
 0x1c3   : > { %v706_v6 = vadd.f32 %v2939_v14, %v705_v1 }
 0x1c6   : > { %1276 = vrot.lane.b32.xlu0 %v3227_v4, %s2569_s14 }
 0x1c7   : > { %1340 = vrot.lane.b32.xlu1 %v3229_v5, %s2570_s19  ;;  %1152 = vrot.lane.b32.xlu2 %v3229_v5, %s2564_s0 }
 0x1c8   : > { %v1331_v0 = vpop.permute.xlu0 %1330 }
 0x1c9   : > { %v3242_v8 = vpop.permute.xlu1 %1078  ;;  %v1540_v9 = vsel %vm1536_vm9, %v1523_v43, %v1331_v0  ;;  %v1081_v10 = vpop.permute.xlu2 %1080 }
 0x1ca   : > { %v1557_v11 = vsel %vm1553_vm10, %v1540_v9, %v1395_v63  ;;  %v3333_v63 = vld [vmem:[#allocation2 + $0xb1] sm:$0xff]  ;;  %v711_v9 = vmax.f32 %v706_v6, 0.0  ;;  %v1475_v15 = vsel %vm1469_vm6, %v3203_v52, %v3242_v8 }
 0x1cb   : > { %2095 = vmatmul.msk.f32.vlgmr.msra.gmra.mxu3 %vm1579_vm11, %v1557_v11 }
 0x1cc   : > { %v774_v12 = vsel %vm3344_vm12, %v711_v9, 0.0 }
 0x1cd   : > { %777 = vst.msk [vmem:[#allocation2 + $0xd9] sm:$0xff] %vm713_vm1, %v774_v12 }
 0x1ce   : > { %1342 = vrot.lane.b32.xlu0 %v3247_v16, %s2570_s19 }
 0x1cf   : > { %1088 = vrot.lane.b32.xlu1 %v3227_v4, %s2565_s15  ;;  %1404 = vrot.lane.b32.xlu2 %v3254_v18, %s2571_s23 }
 0x1d0   : > { %v1205_v20 = vpop.permute.xlu0 %1204 }
 0x1d1   : > { %v1019_v21 = vpop.permute.xlu1 %1018  ;;  %v1397_v23 = vpop.permute.xlu2 %1396  ;;  %v1507_v34 = vsel %vm1502_vm7, %v1490_v53, %v1205_v20 }
 0x1d2   : > { %v3262_v22 = vsel %vm1452_vm5, %v1443_v19, %v1019_v21 }
 0x1d6   : > { %1216 = vrot.lane.b32.xlu0 %v3254_v18, %s2567_s4 }
 0x1d7   : > { %1406 = vrot.lane.b32.xlu1 %v3269_v31, %s2571_s23  ;;  %1278 = vrot.lane.b32.xlu2 %v3275_v13, %s2569_s14 }
 0x1d8   : > { %v3280_v38 = vpop.permute.xlu0 %1142 }
 0x1d9   : > { %v1393_v30 = vpop.permute.xlu1 %1392  ;;  %v3284_v39 = vpop.permute.xlu2 %1146 }
 0x1da   : > { %v1556_v40 = vsel %vm1553_vm10, %v1539_v35, %v1393_v30  ;;  %v1713_v30 = vld [vmem:[%s3797_s3] sm:$0xf] }
 0x1db   : > { %2094 = vmatmul.msk.f32.gmra.mxu2 %vm1579_vm11, %v1556_v40  ;;  %2108 = vmatpush.msk.msrb.mxu1 %vm1628_vm4, %v1713_v30  ;;  %v920_v35 = vld [vmem:[#allocation2 + $0xc2] sm:$0xff] }
 0x1dc   : > { %2147 = vmatpush.msk.msrb.mxu2 %vm1628_vm4, %v1713_v30 }
 0x1de   : > { %1090 = vrot.lane.b32.xlu0 %v3275_v13, %s2565_s15 }
 0x1df   : > { %1154 = vrot.lane.b32.xlu1 %v3247_v16, %s2564_s0  ;;  %1218 = vrot.lane.b32.xlu2 %v3269_v31, %s2567_s4 }
 0x1e0   : > { %v1017_v36 = vpop.permute.xlu0 %1016 }
 0x1e1   : > { %v1269_v45 = vpop.permute.xlu1 %1268  ;;  %v1459_v48 = vsel %vm1452_vm5, %v1442_v41, %v1017_v36  ;;  %v1021_v49 = vpop.permute.xlu2 %1020 }
 0x1e2   : > { %v3303_v55 = vsel %vm1469_vm6, %v1459_v48, %v1081_v10  ;;  %v1524_v46 = vsel %vm1519_vm8, %v1507_v34, %v1269_v45 }
 0x1e6   : > { %1408 = vrot.lane.b32.xlu0 %v3308_v2, %s2571_s23 }
 0x1e7   : > { %1280 = vrot.lane.b32.xlu1 %v3310_v59, %s2569_s14  ;;  %1344 = vrot.lane.b32.xlu2 %v3318_v28, %s2570_s19 }
 0x1e8   : > { %v1333_v58 = vpop.permute.xlu0 %1332 }
 0x1e9   : > { %v3324_v57 = vpop.permute.xlu1 %1144  ;;  %v1541_v29 = vsel %vm1536_vm9, %v1524_v46, %v1333_v58  ;;  %v3327_v61 = vpop.permute.xlu2 %1272  ;;  %v3420_v46 = vld [vmem:[%s3798_s7] ss:$0 sm:$0xff] }
 0x1ea   : > { %v1558_v62 = vsel %vm1553_vm10, %v1541_v29, %v1397_v23  ;;  %v1492_v56 = vsel %vm517_vm0, %v3303_v55, %v3324_v57  ;;  %v921_v29 = vld [vmem:[#allocation2 + $0xca] sm:$0xff] }
 0x1eb   : > { %2096 = vmatmul.msk.f32.gmra.mxu3 %vm1579_vm11, %v1558_v62 }
 0x1ee   : > { %1282 = vrot.lane.b32.xlu0 %v3331_v44, %s2569_s14 }
 0x1ef   : > { %1346 = vrot.lane.b32.xlu1 %v3333_v63, %s2570_s19  ;;  %1410 = vrot.lane.b32.xlu2 %v3339_v3, %s2571_s23 }
 0x1f0   : > { %v1399_v43 = vpop.permute.xlu0 %1398 }
 0x1f1   : > { %v957_v0 = vpop.permute.xlu1 %956  ;;  %v3350_v11 = vpop.permute.xlu2 %1336 }
 0x1f2   : > { %v1444_v10 = vsel %vm713_vm1, %v3072_v25, %v957_v0  ;;  %v708_v25 = vpop.f32.mrf.mxu2 }
 0x1f3   : > { %v3355_v50 = vsel %vm1452_vm5, %v1444_v10, %v1021_v49  ;;  %v709_v20 = vadd.f32 %v2939_v14, %v708_v25  ;;  %v889_v49 = vld [vmem:[#allocation2 + $0xc8] sm:$0xff]  ;;  %v906_v25 = vld [vmem:[#allocation2 + $0xd9] sm:$0xff] }
 0x1f5   : > { %v712_v23 = vmax.f32 %v709_v20, 0.0 }
 0x1f6   : > { %964 = vrot.lane.b32.xlu0 %v3229_v5, %s2566_s20  ;;  %v1491_v5 = vsel %vm517_vm0, %v1475_v15, %v3280_v38 }
 0x1f7   : > { %1028 = vrot.lane.b32.xlu1 %v3254_v18, %s2568_s21  ;;  %1092 = vrot.lane.b32.xlu2 %v3310_v59, %s2565_s15  ;;  %v775_v18 = vsel %vm3344_vm12, %v712_v23, 0.0  ;;  %v1508_v14 = vsel %vm1502_vm7, %v1491_v5, %v3217_v42  ;;  %v904_v42 = vld [vmem:[#allocation2 + $0xc1] sm:$0xff] }
 0x1f8   : > { %v1209_v17 = vpop.permute.xlu0 %1208  ;;  %778 = vst.msk [vmem:[#allocation2 + $0xe1] sm:$0xff] %vm713_vm1, %v775_v18 }
 0x1f9   : > { %v1271_v19 = vpop.permute.xlu1 %1270  ;;  %v3365_v21 = vpop.permute.xlu2 %960  ;;  %v1509_v34 = vsel %vm1502_vm7, %v1492_v56, %v1209_v17 }
 0x1fa   : > { %v1525_v52 = vsel %vm1519_vm8, %v1508_v14, %v1271_v19  ;;  %v1526_v58 = vsel %vm1519_vm8, %v1509_v34, %v3327_v61 }
 0x1fb   : > { %v1543_v61 = vsel %vm1536_vm9, %v1526_v58, %v3350_v11 }
 0x1fe   : > { %1156 = vrot.lane.b32.xlu0 %v3318_v28, %s2564_s0 }
 0x1ff   : > { %1220 = vrot.lane.b32.xlu1 %v3308_v2, %s2567_s4  ;;  %1284 = vrot.lane.b32.xlu2 %v888_v24, %s2569_s14  ;;  %v922_v17 = vld [vmem:[#allocation2 + $0xda] sm:$0xff] }
 0x200   : > { %v1083_v8 = vpop.permute.xlu0 %1082 }
 0x201   : > { %v1335_v26 = vpop.permute.xlu1 %1334  ;;  %v1339_v37 = vpop.permute.xlu2 %1338  ;;  %v1477_v57 = vsel %vm1469_vm6, %v3262_v22, %v1083_v8 }
 0x202   : > { %v1542_v27 = vsel %vm1536_vm9, %v1525_v52, %v1335_v26 }
 0x203   : > { %v1559_v38 = vsel %vm1553_vm10, %v1542_v27, %v1399_v43 }
 0x204   : > { %2097 = vmatmul.msk.f32.gmra.mxu3 %vm1579_vm11, %v1559_v38 }
 0x206   : > { %1348 = vrot.lane.b32.xlu0 %v904_v42, %s2570_s19 }
 0x207   : > { %1412 = vrot.lane.b32.xlu1 %v920_v35, %s2571_s23  ;;  %966 = vrot.lane.b32.xlu2 %v3247_v16, %s2566_s20  ;;  %v905_v16 = vld [vmem:[#allocation2 + $0xc9] sm:$0xff] }
 0x208   : > { %v3395_v40 = vpop.permute.xlu0 %958 }
 0x209   : > { %v1211_v41 = vpop.permute.xlu1 %1210  ;;  %v1213_v36 = vpop.permute.xlu2 %1212 }
 0x20e   : > { %1030 = vrot.lane.b32.xlu0 %v3269_v31, %s2568_s21 }
 0x20f   : > { %1094 = vrot.lane.b32.xlu1 %v3331_v44, %s2565_s15  ;;  %1158 = vrot.lane.b32.xlu2 %v3333_v63, %s2564_s0 }
 0x210   : > { %v1085_v45 = vpop.permute.xlu0 %1084 }
 0x211   : > { %v3403_v47 = vpop.permute.xlu1 %1022  ;;  %v3405_v48 = vpop.permute.xlu2 %1086  ;;  %v1478_v15 = vsel %vm1469_vm6, %v3355_v50, %v1085_v45 }
 0x216   : > { %1222 = vrot.lane.b32.xlu0 %v3339_v3, %s2567_s4 }
 0x217   : > { %1286 = vrot.lane.b32.xlu1 %v889_v49, %s2569_s14  ;;  %1350 = vrot.lane.b32.xlu2 %v905_v16, %s2570_s19 }
 0x218   : > { %v1275_v31 = vpop.permute.xlu0 %1274 }
 0x219   : > { %v1149_v54 = vpop.permute.xlu1 %1148  ;;  %v3414_v53 = vpop.permute.xlu2 %1026 }
 0x21a   : > { %v1494_v5 = vsel %vm517_vm0, %v1478_v15, %v1149_v54 }
 0x21b   : > { %v1511_v18 = vsel %vm1502_vm7, %v1494_v5, %v1213_v36  ;;  %v923_v36 = vld [vmem:[#allocation2 + $0xe2] sm:$0xff] }
 0x21e   : > { %1414 = vrot.lane.b32.xlu0 %v921_v29, %s2571_s23  ;;  %v1649_v62 = vpop.f32.mrf.mxu2 }
 0x21f   : > { %968 = vrot.lane.b32.xlu1 %v3318_v28, %s2566_s20  ;;  %v1650_v55 = vadd.f32 %v3420_v46, %v1649_v62  ;;  %1032 = vrot.lane.b32.xlu2 %v3308_v2, %s2568_s21  ;;  %v1493_v28 = vsel %vm517_vm0, %v1477_v57, %v3284_v39  ;;  %v890_v39 = vld [vmem:[#allocation2 + $0xd8] sm:$0xff] }
 0x220   : > { %v1403_v32 = vpop.permute.xlu0 %1402  ;;  %v1510_v2 = vsel %vm1502_vm7, %v1493_v28, %v1211_v41 }
 0x221   : > { %v1401_v1 = vpop.permute.xlu1 %1400  ;;  %v1697_v6 = vmax.f32 %v1650_v55, 0.0  ;;  %v3434_v7 = vpop.permute.xlu2 %1152  ;;  %v1527_v22 = vsel %vm1519_vm8, %v1510_v2, %v1275_v31 }
 0x222   : > { %v1560_v43 = vsel %vm1553_vm10, %v1543_v61, %v1401_v1  ;;  %v1544_v10 = vsel %vm1536_vm9, %v1527_v22, %v1339_v37  ;;  %v891_v37 = vld [vmem:[#allocation2 + $0xe0] sm:$0xff] }
 0x223   : > { %2098 = vmatmul.msk.f32.gmra.mxu3 %vm1579_vm11, %v1560_v43  ;;  %2109 = vmatmul.msk.f32.vlgmr.msrb.gmra.mxu1 %vm713_vm1, %v1697_v6  ;;  %v1561_v12 = vsel %vm1553_vm10, %v1544_v10, %v1403_v32 }
 0x226   : > { %1096 = vrot.lane.b32.xlu0 %v888_v24, %s2565_s15 }
 0x227   : > { %1160 = vrot.lane.b32.xlu1 %v904_v42, %s2564_s0  ;;  %1224 = vrot.lane.b32.xlu2 %v920_v35, %s2567_s4 }
 0x228   : > { %v1151_v0 = vpop.permute.xlu0 %1150 }
 0x229   : > { %v1215_v9 = vpop.permute.xlu1 %1214  ;;  %v1405_v11 = vpop.permute.xlu2 %1404 }
 0x22b   : > { %2099 = vmatmul.msk.f32.gmra.mxu3 %vm1579_vm11, %v1561_v12 }
 0x22e   : > { %1288 = vrot.lane.b32.xlu0 %v890_v39, %s2569_s14 }
 0x22f   : > { %1352 = vrot.lane.b32.xlu1 %v906_v25, %s2570_s19  ;;  %1416 = vrot.lane.b32.xlu2 %v922_v17, %s2571_s23 }
 0x230   : > { %v1025_v19 = vpop.permute.xlu0 %1024 }
 0x231   : > { %v963_v20 = vpop.permute.xlu1 %962  ;;  %v1279_v23 = vpop.permute.xlu2 %1278 }
 0x232   : > { %v1447_v57 = vsel %vm713_vm1, %v3180_v33, %v963_v20 }
 0x233   : > { %v1464_v43 = vsel %vm1452_vm5, %v1447_v57, %v3414_v53 }
 0x236   : > { %970 = vrot.lane.b32.xlu0 %v3333_v63, %s2566_s20  ;;  %v1445_v63 = vsel %vm713_vm1, %v3122_v51, %v3395_v40  ;;  %v907_v40 = vld [vmem:[#allocation2 + $0xe1] sm:$0xff]  ;;  %s3799_s20 = sld [smem:[#allocation34_spill]] }
 0x237   : > { %1034 = vrot.lane.b32.xlu1 %v3339_v3, %s2568_s21  ;;  %1098 = vrot.lane.b32.xlu2 %v889_v49, %s2565_s15  ;;  %v1462_v38 = vsel %vm1452_vm5, %v1445_v63, %v3403_v47 }
 0x238   : > { %v1277_v24 = vpop.permute.xlu0 %1276  ;;  %v1479_v41 = vsel %vm1469_vm6, %v1462_v38, %v3405_v48 }
 0x239   : > { %v1341_v14 = vpop.permute.xlu1 %1340  ;;  %v1528_v52 = vsel %vm1519_vm8, %v1511_v18, %v1277_v24  ;;  %v1219_v26 = vpop.permute.xlu2 %1218  ;;  %v1495_v51 = vsel %vm517_vm0, %v1479_v41, %v1151_v0 }
 0x23a   : > { %v1545_v8 = vsel %vm1536_vm9, %v1528_v52, %v1341_v14  ;;  %v1512_v45 = vsel %vm1502_vm7, %v1495_v51, %v1215_v9 }
 0x23b   : > { %v1562_v50 = vsel %vm1553_vm10, %v1545_v8, %v1405_v11  ;;  %v1529_v47 = vsel %vm1519_vm8, %v1512_v45, %v1279_v23 }
 0x23c   : > { %2100 = vmatmul.msk.f32.gmra.mxu3 %vm1579_vm11, %v1562_v50 }
 0x23d   : > { %v1652_v27 = vpop.f32.mrf.mxu2 }
 0x23e   : > { %v1653_v3 = vadd.f32 %v3420_v46, %v1652_v27  ;;  %1162 = vrot.lane.b32.xlu0 %v905_v16, %s2564_s0 }
 0x23f   : > { %1226 = vrot.lane.b32.xlu1 %v921_v29, %s2567_s4  ;;  %1290 = vrot.lane.b32.xlu2 %v891_v37, %s2569_s14  ;;  %v1446_v29 = vsel %vm713_vm1, %v3133_v60, %v3365_v21  ;;  %s3556_s4 = scalar_lea.vmem [#allocation9], %s2067_s24  ;;  %s3800_s24 = sld [smem:[#allocation18_spill]] }
 0x240   : > { %v1698_v30 = vmax.f32 %v1653_v3, 0.0  ;;  %v1343_v42 = vpop.permute.xlu0 %1342  ;;  %v1463_v62 = vsel %vm1452_vm5, %v1446_v29, %v1025_v19  ;;  %s2139_s14 = sshll.u32 %s3789_s17, 4  ;;  %s1898_s1 = sshll.u32 %s3556_s4, 4  ;;  %s1899_s1 = int_to_ptr.vmem [resolvable:$true] %s1898_s1 }
 0x241   : > { %v1089_v35 = vpop.permute.xlu1 %1088  ;;  %v1345_v49 = vpop.permute.xlu2 %1344  ;;  %v1546_v16 = vsel %vm1536_vm9, %v1529_v47, %v1343_v42  ;;  %s1883_s17 = scalar_lea.sflag [#allocation5], %s2858_s25 }
 0x242   : > { %2110 = vmatmul.msk.f32.gmra.mxu1 %vm713_vm1, %v1698_v30  ;;  %v1480_v55 = vsel %vm1469_vm6, %v1463_v62, %v1089_v35 }
 0x243   : > { %v1496_v32 = vsel %vm517_vm0, %v1480_v55, %v3434_v7 }
 0x246   : > { %1354 = vrot.lane.b32.xlu0 %v907_v40, %s2570_s19  ;;  %s2128_s19 = sshll.u32 %s3800_s24, 5  ;;  %s2425_s24 = scalar_lea.hbm %s3802_s6, 512 }
 0x247   : > { %1418 = vrot.lane.b32.xlu1 %v923_v36, %s2571_s23  ;;  %s1895_s23 = sadd.s32 %s2139_s14, %s2128_s19 }
 0x248   : > { %v1217_v31 = vpop.permute.xlu0 %1216  ;;  %s2129_s27 = sshll.u32 %s1895_s23, 3 }
 0x249   : > { %v1407_v54 = vpop.permute.xlu1 %1406  ;;  %v1411_v58 = vpop.permute.xlu2 %1410  ;;  %v1513_v1 = vsel %vm1502_vm7, %v1496_v32, %v1217_v31  ;;  %s1897_s3 = scalar_lea.hbm %s3801_s18, %s2129_s27 }
 0x24a   : > { %v1563_v48 = vsel %vm1553_vm10, %v1546_v16, %v1407_v54  ;;  %s1900_s5 = sshll.u32 %s1897_s3, 4  ;;  %s1901_s5 = int_to_ptr.hbm [resolvable:$true] %s1900_s5 }
 0x24b   : > { %2101 = vmatmul.msk.f32.gmra.mxu3 %vm1579_vm11, %v1563_v48  ;;  %s2419_s7 = sshra.s32 %s1901_s5, 4  ;;  %s2420_s7 = int_to_ptr.hbm [resolvable:$true] %s2419_s7 }
 0x24c   : > { %s2421_s0 = scalar_lea.hbm %s2420_s7, 128  ;;  %p2426_p8 = scmp.lt.s32.totalorder %s2420_s7, %s3802_s6 }
 0x24d   : > { %p2422_p7 = scmp.ne.s32.totalorder %s2420_s7, %s2421_s0  ;;  %p2427_p9 = scmp.lt.s32.totalorder %s2425_s24, %s2421_s0 }
 0x24e   : > { %v1658_v12 = vpop.f32.mrf.mxu3 }
 0x24f   : > { %v1659_v19 = vadd.f32 %v3420_v46, %v1658_v12  ;;  %p2423_p3 = pnand %p2422_p7, %p2794_p4  ;;  %p2428_p10 = por %p2427_p9, %p2426_p8 }
 0x250   : > { %v1091_v56 = vpop.permute.xlu0 %1090 }
 0x251   : > { %v1155_v34 = vpop.permute.xlu1 %1154  ;;  %v1481_v60 = vsel %vm1469_vm6, %v1464_v43, %v1091_v56  ;;  %v1093_v2 = vpop.permute.xlu2 %1092  ;;  %v1700_v23 = vmax.f32 %v1659_v19, 0.0  ;;  %p2424_p5 = pneg %p2423_p3 }
 0x252   : > { %v1497_v33 = vsel %vm517_vm0, %v1481_v60, %v1155_v34 }
 0x253   : > { %v1514_v53 = vsel %vm1502_vm7, %v1497_v33, %v1219_v26  ;;  %p2429_p12 = pnand %p2428_p10, %p2424_p5 }
 0x258   : > { %v1409_v61 = vpop.permute.xlu0 %1408 }
 0x259   : > { %v1281_v6 = vpop.permute.xlu1 %1280  ;;  %v1285_v20 = vpop.permute.xlu2 %1284 }
 0x25a   : > { %v1530_v28 = vsel %vm1519_vm8, %v1513_v1, %v1281_v6 }
 0x25b   : > { %v1547_v21 = vsel %vm1536_vm9, %v1530_v28, %v1345_v49 }
 0x25c   : > { %v1564_v22 = vsel %vm1553_vm10, %v1547_v21, %v1409_v61 }
 0x25d   : > { %2102 = vmatmul.msk.f32.gmra.mxu3 %vm1579_vm11, %v1564_v22 }
 0x25e   : > { %v1655_v7 = vpop.f32.mrf.mxu2 }
 0x25f   : > { %v1656_v0 = vadd.f32 %v3420_v46, %v1655_v7 }
 0x260   : > { %v1283_v10 = vpop.permute.xlu0 %1282 }
 0x261   : > { %v1699_v9 = vmax.f32 %v1656_v0, 0.0  ;;  %v1347_v11 = vpop.permute.xlu1 %1346  ;;  %v1531_v39 = vsel %vm1519_vm8, %v1514_v53, %v1283_v10  ;;  %v967_v52 = vpop.permute.xlu2 %966 }
 0x262   : > { %v1548_v25 = vsel %vm1536_vm9, %v1531_v39, %v1347_v11  ;;  %v1449_v36 = vsel %vm713_vm1, %v3275_v13, %v967_v52  ;;  %v2299_v11 = vld [vmem:[%s2864_s26] sm:$0xff] }
 0x263   : > { %2111 = vmatmul.msk.f32.gmra.mxu1 %vm713_vm1, %v1699_v9  ;;  %v1565_v17 = vsel %vm1553_vm10, %v1548_v25, %v1411_v58 }
 0x265   : > { %2103 = vmatmul.msk.f32.gmra.mxu3 %vm1579_vm11, %v1565_v17 }
 0x268   : > { %v965_v15 = vpop.permute.xlu0 %964 }
 0x269   : > { %v1029_v5 = vpop.permute.xlu1 %1028  ;;  %v1448_v24 = vsel %vm713_vm1, %v3227_v4, %v965_v15  ;;  %v1159_v42 = vpop.permute.xlu2 %1158 }
 0x26a   : > { %v1465_v18 = vsel %vm1452_vm5, %v1448_v24, %v1029_v5 }
 0x26b   : > { %2112 = vmatmul.msk.f32.gmra.mxu1 %vm713_vm1, %v1700_v23  ;;  %v1482_v63 = vsel %vm1469_vm6, %v1465_v18, %v1093_v2  ;;  %v3544_v2 = vld [vmem:[%s3799_s20] ss:$0 sm:$0xff] }
 0x26e   : > { %v1661_v14 = vpop.f32.mrf.mxu3 }
 0x26f   : > { %v1662_v8 = vadd.f32 %v3420_v46, %v1661_v14 }
 0x270   : > { %v1157_v50 = vpop.permute.xlu0 %1156 }
 0x271   : > { %v1221_v26 = vpop.permute.xlu1 %1220  ;;  %v1701_v27 = vmax.f32 %v1662_v8, 0.0  ;;  %v1498_v3 = vsel %vm517_vm0, %v1482_v63, %v1157_v50  ;;  %v1351_v45 = vpop.permute.xlu2 %1350 }
 0x272   : > { %v1515_v37 = vsel %vm1502_vm7, %v1498_v3, %v1221_v26 }
 0x273   : > { %2113 = vmatmul.msk.f32.gmra.mxu1 %vm713_vm1, %v1701_v27  ;;  %v1532_v4 = vsel %vm1519_vm8, %v1515_v37, %v1285_v20 }
 0x278   : > { %v1349_v38 = vpop.permute.xlu0 %1348 }
 0x279   : > { %v1413_v30 = vpop.permute.xlu1 %1412  ;;  %v1549_v35 = vsel %vm1536_vm9, %v1532_v4, %v1349_v38  ;;  %v1033_v29 = vpop.permute.xlu2 %1032 }
 0x27a   : > { %v1566_v41 = vsel %vm1553_vm10, %v1549_v35, %v1413_v30 }
 0x27b   : > { %2104 = vmatmul.msk.f32.gmra.mxu3 %vm1579_vm11, %v1566_v41 }
 0x280   : > { %v1031_v51 = vpop.permute.xlu0 %1030 }
 0x281   : > { %v1095_v40 = vpop.permute.xlu1 %1094  ;;  %v1466_v47 = vsel %vm1452_vm5, %v1449_v36, %v1031_v51  ;;  %v1225_v61 = vpop.permute.xlu2 %1224 }
 0x282   : > { %v1483_v49 = vsel %vm1469_vm6, %v1466_v47, %v1095_v40 }
 0x283   : > { %v1499_v34 = vsel %vm517_vm0, %v1483_v49, %v1159_v42 }
 0x287   : > { %v1664_v16 = vpop.f32.mrf.mxu3 }
 0x288   : > { %v1665_v31 = vadd.f32 %v3420_v46, %v1664_v16  ;;  %v1223_v54 = vpop.permute.xlu0 %1222 }
 0x289   : > { %v1287_v48 = vpop.permute.xlu1 %1286  ;;  %v1516_v58 = vsel %vm1502_vm7, %v1499_v34, %v1223_v54  ;;  %v1417_v10 = vpop.permute.xlu2 %1416 }
 0x28a   : > { %v1702_v56 = vmax.f32 %v1665_v31, 0.0  ;;  %v1533_v13 = vsel %vm1519_vm8, %v1516_v58, %v1287_v48 }
 0x28b   : > { %v1550_v57 = vsel %vm1536_vm9, %v1533_v13, %v1351_v45  ;;  %v2300_v45 = vld [vmem:[%s2864_s26 + $0x8] sm:$0xff]  ;;  %v2301_v13 = vld [vmem:[%s2864_s26 + $0x10] sm:$0xff] }
 0x28c   : > { %2114 = vmatmul.msk.f32.gmra.mxu1 %vm713_vm1, %v1702_v56 }
 0x290   : > { %v1415_v62 = vpop.permute.xlu0 %1414 }
 0x291   : > { %v969_v55 = vpop.permute.xlu1 %968  ;;  %v1567_v32 = vsel %vm1553_vm10, %v1550_v57, %v1415_v62  ;;  %v1099_v24 = vpop.permute.xlu2 %1098 }
 0x292   : > { %2105 = vmatmul.msk.f32.gmra.mxu3 %vm1579_vm11, %v1567_v32  ;;  %v1450_v1 = vsel %vm713_vm1, %v3310_v59, %v969_v55 }
 0x293   : > { %v1467_v28 = vsel %vm1452_vm5, %v1450_v1, %v1033_v29 }
 0x298   : > { %v1097_v6 = vpop.permute.xlu0 %1096 }
 0x299   : > { %v1161_v43 = vpop.permute.xlu1 %1160  ;;  %v1484_v60 = vsel %vm1469_vm6, %v1467_v28, %v1097_v6  ;;  %v1291_v37 = vpop.permute.xlu2 %1290 }
 0x29a   : > { %v1500_v21 = vsel %vm517_vm0, %v1484_v60, %v1161_v43  ;;  %v2302_v43 = vld [vmem:[%s2864_s26 + $0x18] sm:$0xff] }
 0x29b   : > { %v1517_v33 = vsel %vm1502_vm7, %v1500_v21, %v1225_v61 }
 0x2a0   : > { %v1289_v22 = vpop.permute.xlu0 %1288  ;;  %v1786_v59 = vpop.f32.mrf.mxu1 }
 0x2a1   : > { %v1534_v7 = vsel %vm1519_vm8, %v1517_v33, %v1289_v22  ;;  %v1787_v0 = vadd.f32 %v3544_v2, %v1786_v59  ;;  %v1353_v9 = vpop.permute.xlu1 %1352  ;;  %v2303_v33 = vld [vmem:[%s2864_s26 + $0x20] sm:$0xff] }
 0x2a2   : > { %v1551_v53 = vsel %vm1536_vm9, %v1534_v7, %v1353_v9 }
 0x2a3   : > { %v1834_v12 = vadd.f32 %v2299_v11, %v1787_v0  ;;  %v1568_v39 = vsel %vm1553_vm10, %v1551_v53, %v1417_v10 }
 0x2a4   : > { %2106 = vmatmul.msk.f32.gmra.mxu3 %vm1579_vm11, %v1568_v39 }
 0x2a5   : > { %v1850_v25 = vmax.f32 %v1834_v12, 0.0  ;;  %v2304_v12 = vld [vmem:[%s2864_s26 + $0x28] sm:$0xff] }
 0x2a6   : > { %v1667_v17 = vpop.f32.mrf.mxu3 }
 0x2a7   : > { %v1668_v19 = vadd.f32 %v3420_v46, %v1667_v17  ;;  %1866 = vst.msk [vmem:[%s3556_s4] sm:$0xff] %vm517_vm0, %v1850_v25 }
 0x2a8   : > { %v971_v23 = vpop.permute.xlu0 %970 }
 0x2a9   : > { %v1703_v20 = vmax.f32 %v1668_v19, 0.0  ;;  %v1035_v15 = vpop.permute.xlu1 %1034  ;;  %v1451_v5 = vsel %vm713_vm1, %v3331_v44, %v971_v23 }
 0x2aa   : > { %v1468_v14 = vsel %vm1452_vm5, %v1451_v5, %v1035_v15 }
 0x2ab   : > { %2115 = vmatmul.msk.f32.gmra.mxu1 %vm713_vm1, %v1703_v20  ;;  %v1485_v26 = vsel %vm1469_vm6, %v1468_v14, %v1099_v24  ;;  %v2305_v14 = vld [vmem:[%s2864_s26 + $0x30] sm:$0xff] }
 0x2ae   : > { %v1670_v18 = vpop.f32.mrf.mxu3 }
 0x2af   : > { %v1671_v52 = vadd.f32 %v3420_v46, %v1670_v18 }
 0x2b0   : > { %v1163_v50 = vpop.permute.xlu0 %1162 }
 0x2b1   : > { %v1704_v8 = vmax.f32 %v1671_v52, 0.0  ;;  %v1227_v27 = vpop.permute.xlu1 %1226  ;;  %v1501_v63 = vsel %vm517_vm0, %v1485_v26, %v1163_v50 }
 0x2b2   : > { %v1518_v3 = vsel %vm1502_vm7, %v1501_v63, %v1227_v27  ;;  %v2306_v27 = vld [vmem:[%s2864_s26 + $0x38] sm:$0xff] }
 0x2b3   : > { %2116 = vmatmul.msk.f32.gmra.mxu1 %vm713_vm1, %v1704_v8  ;;  %v1535_v38 = vsel %vm1519_vm8, %v1518_v3, %v1291_v37 }
 0x2b8   : > { %v1355_v44 = vpop.permute.xlu0 %1354 }
 0x2b9   : > { %v1552_v4 = vsel %vm1536_vm9, %v1535_v38, %v1355_v44  ;;  %v1419_v30 = vpop.permute.xlu1 %1418 }
 0x2ba   : > { %v1569_v42 = vsel %vm1553_vm10, %v1552_v4, %v1419_v30 }
 0x2bb   : > { %2107 = vmatmul.msk.f32.gmra.mxu3 %vm1579_vm11, %v1569_v42  ;;  %v2307_v42 = vld [vmem:[%s2864_s26 + $0x40] sm:$0xff] }
 0x2bf   : > { %v1673_v35 = vpop.f32.mrf.mxu3  ;;  %v1789_v41 = vpop.f32.mrf.mxu1 }
 0x2c0   : > { %v1674_v51 = vadd.f32 %v3420_v46, %v1673_v35  ;;  %v1790_v40 = vadd.f32 %v3544_v2, %v1789_v41 }
 0x2c2   : > { %v1705_v36 = vmax.f32 %v1674_v51, 0.0  ;;  %v1835_v47 = vadd.f32 %v2300_v45, %v1790_v40 }
 0x2c4   : > { %v1851_v49 = vmax.f32 %v1835_v47, 0.0  ;;  %2117 = vmatmul.msk.f32.gmra.mxu1 %vm713_vm1, %v1705_v36  ;;  %v2308_v36 = vld [vmem:[%s2864_s26 + $0x48] sm:$0xff] }
 0x2c6   : > { %1867 = vst.msk [vmem:[%s3556_s4 + $0x8] sm:$0xff] %vm517_vm0, %v1851_v49 }
 0x2ce   : > { %v1676_v16 = vpop.f32.mrf.mxu3 }
 0x2cf   : > { %v1677_v31 = vadd.f32 %v3420_v46, %v1676_v16  ;;  %v2309_v16 = vld [vmem:[%s2864_s26 + $0x50] sm:$0xff] }
 0x2d1   : > { %v1706_v54 = vmax.f32 %v1677_v31, 0.0 }
 0x2d3   : > { %2118 = vmatmul.msk.f32.gmra.mxu1 %vm713_vm1, %v1706_v54 }
 0x2e0   : > { %v1679_v48 = vpop.f32.mrf.mxu3  ;;  %v1792_v56 = vpop.f32.mrf.mxu1 }
 0x2e1   : > { %v1680_v34 = vadd.f32 %v3420_v46, %v1679_v48  ;;  %v1793_v58 = vadd.f32 %v3544_v2, %v1792_v56 }
 0x2e3   : > { %v1707_v29 = vmax.f32 %v1680_v34, 0.0  ;;  %v1836_v62 = vadd.f32 %v2301_v13, %v1793_v58  ;;  %v2310_v34 = vld [vmem:[%s2864_s26 + $0x58] sm:$0xff] }
 0x2e5   : > { %v1852_v55 = vmax.f32 %v1836_v62, 0.0  ;;  %2119 = vmatmul.msk.f32.gmra.mxu1 %vm713_vm1, %v1707_v29 }
 0x2e7   : > { %1868 = vst.msk [vmem:[%s3556_s4 + $0x10] sm:$0xff] %vm517_vm0, %v1852_v55  ;;  %v2311_v55 = vld [vmem:[%s2864_s26 + $0x60] sm:$0xff] }
 0x2e8   : > { %v1682_v57 = vpop.f32.mrf.mxu3  ;;  %v1795_v32 = vpop.f32.mrf.mxu1 }
 0x2e9   : > { %v1683_v1 = vadd.f32 %v3420_v46, %v1682_v57  ;;  %v1796_v61 = vadd.f32 %v3544_v2, %v1795_v32 }
 0x2eb   : > { %v1708_v6 = vmax.f32 %v1683_v1, 0.0  ;;  %v1837_v28 = vadd.f32 %v2302_v43, %v1796_v61 }
 0x2ed   : > { %v1853_v60 = vmax.f32 %v1837_v28, 0.0  ;;  %2120 = vmatmul.msk.f32.gmra.mxu1 %vm713_vm1, %v1708_v6  ;;  %v2312_v6 = vld [vmem:[%s2864_s26 + $0x68] sm:$0xff] }
 0x2ef   : > { %1869 = vst.msk [vmem:[%s3556_s4 + $0x18] sm:$0xff] %vm517_vm0, %v1853_v60 }
 0x2f0   : > { %v1798_v21 = vpop.f32.mrf.mxu1 }
 0x2f1   : > { %v1799_v22 = vadd.f32 %v3544_v2, %v1798_v21 }
 0x2f3   : > { %v1838_v59 = vadd.f32 %v2303_v33, %v1799_v22  ;;  %v2313_v22 = vld [vmem:[%s2864_s26 + $0x70] sm:$0xff] }
 0x2f5   : > { %v1854_v7 = vmax.f32 %v1838_v59, 0.0 }
 0x2f7   : > { %1870 = vst.msk [vmem:[%s3556_s4 + $0x20] sm:$0xff] %vm517_vm0, %v1854_v7 }
 0x2fe   : > { %v1685_v0 = vpop.f32.mrf.mxu3 }
 0x2ff   : > { %v1686_v9 = vadd.f32 %v3420_v46, %v1685_v0 }
 0x301   : > { %v1709_v10 = vmax.f32 %v1686_v9, 0.0  ;;  %v2314_v9 = vld [vmem:[%s2864_s26 + $0x78] sm:$0xff] }
 0x303   : > { %2121 = vmatmul.msk.f32.vlgmr.msrb.gmra.mxu2 %vm713_vm1, %v1709_v10 }
 0x309   : > { %v1801_v53 = vpop.f32.mrf.mxu1 }
 0x30a   : > { %v1802_v11 = vadd.f32 %v3544_v2, %v1801_v53 }
 0x30c   : > { %v1839_v39 = vadd.f32 %v2304_v12, %v1802_v11 }
 0x30e   : > { %v1855_v25 = vmax.f32 %v1839_v39, 0.0 }
 0x310   : > { %1871 = vst.msk [vmem:[%s3556_s4 + $0x28] sm:$0xff] %vm517_vm0, %v1855_v25 }
 0x315   : > { %v1688_v17 = vpop.f32.mrf.mxu3 }
 0x316   : > { %v1689_v19 = vadd.f32 %v3420_v46, %v1688_v17 }
 0x318   : > { %v1710_v20 = vmax.f32 %v1689_v19, 0.0 }
 0x31a   : > { %2122 = vmatmul.msk.f32.gmra.mxu2 %vm713_vm1, %v1710_v20 }
 0x327   : > { %v1691_v23 = vpop.f32.mrf.mxu3 }
 0x328   : > { %v1804_v15 = vpop.f32.mrf.mxu1  ;;  %v1692_v5 = vadd.f32 %v3420_v46, %v1691_v23 }
 0x329   : > { %v1805_v24 = vadd.f32 %v3544_v2, %v1804_v15 }
 0x32a   : > { %v1711_v18 = vmax.f32 %v1692_v5, 0.0 }
 0x32b   : > { %v1840_v52 = vadd.f32 %v2305_v14, %v1805_v24 }
 0x32c   : > { %2123 = vmatmul.msk.f32.gmra.mxu2 %vm713_vm1, %v1711_v18 }
 0x32d   : > { %v1856_v8 = vmax.f32 %v1840_v52, 0.0 }
 0x32f   : > { %1872 = vst.msk [vmem:[%s3556_s4 + $0x30] sm:$0xff] %vm517_vm0, %v1856_v8 }
 0x330   : > { %v1807_v50 = vpop.f32.mrf.mxu1 }
 0x331   : > { %v1808_v26 = vadd.f32 %v3544_v2, %v1807_v50 }
 0x333   : > { %v1841_v63 = vadd.f32 %v2306_v27, %v1808_v26 }
 0x335   : > { %v1857_v3 = vmax.f32 %v1841_v63, 0.0 }
 0x337   : > { %1873 = vst.msk [vmem:[%s3556_s4 + $0x38] sm:$0xff] %vm517_vm0, %v1857_v3 }
 0x33e   : > { %v1694_v37 = vpop.f32.mrf.mxu3 }
 0x33f   : > { %v1695_v44 = vadd.f32 %v3420_v46, %v1694_v37 }
 0x341   : > { %v1712_v38 = vmax.f32 %v1695_v44, 0.0  ;;  %v1810_v4 = vpop.f32.mrf.mxu1 }
 0x342   : > { %v1811_v30 = vadd.f32 %v3544_v2, %v1810_v4 }
 0x343   : > { %2124 = vmatmul.msk.f32.gmra.mxu2 %vm713_vm1, %v1712_v38 }
 0x344   : > { %v1842_v35 = vadd.f32 %v2307_v42, %v1811_v30 }
 0x346   : > { %v1858_v41 = vmax.f32 %v1842_v35, 0.0 }
 0x348   : > { %1874 = vst.msk [vmem:[%s3556_s4 + $0x40] sm:$0xff] %vm517_vm0, %v1858_v41 }
 0x350   : > { %v1813_v51 = vpop.f32.mrf.mxu1 }
 0x351   : > { %v1814_v40 = vadd.f32 %v3544_v2, %v1813_v51 }
 0x353   : > { %v1843_v46 = vadd.f32 %v2308_v36, %v1814_v40 }
 0x355   : > { %v1859_v45 = vmax.f32 %v1843_v46, 0.0 }
 0x357   : > { %1875 = vst.msk [vmem:[%s3556_s4 + $0x48] sm:$0xff] %vm517_vm0, %v1859_v45 }
 0x362   : > { %v1816_v47 = vpop.f32.mrf.mxu1 }
 0x363   : > { %v1817_v49 = vadd.f32 %v3544_v2, %v1816_v47 }
 0x365   : > { %v1844_v31 = vadd.f32 %v2309_v16, %v1817_v49 }
 0x367   : > { %v1860_v54 = vmax.f32 %v1844_v31, 0.0 }
 0x369   : > { %1876 = vst.msk [vmem:[%s3556_s4 + $0x50] sm:$0xff] %vm517_vm0, %v1860_v54 }
 0x36a   : > { %v1819_v48 = vpop.f32.mrf.mxu1 }
 0x36b   : > { %v1820_v56 = vadd.f32 %v3544_v2, %v1819_v48 }
 0x36d   : > { %v1845_v58 = vadd.f32 %v2310_v34, %v1820_v56 }
 0x36f   : > { %v1861_v29 = vmax.f32 %v1845_v58, 0.0 }
 0x371   : > { %1877 = vst.msk [vmem:[%s3556_s4 + $0x58] sm:$0xff] %vm517_vm0, %v1861_v29 }
 0x386   : > { %v1822_v13 = vpop.f32.mrf.mxu2 }
 0x387   : > { %v1823_v62 = vadd.f32 %v3544_v2, %v1822_v13 }
 0x389   : > { %v1846_v57 = vadd.f32 %v2311_v55, %v1823_v62 }
 0x38b   : > { %v1862_v32 = vmax.f32 %v1846_v57, 0.0 }
 0x38d   : > { %1878 = vst.msk [vmem:[%s3556_s4 + $0x60] sm:$0xff] %vm517_vm0, %v1862_v32 }
 0x39d   : > { %v1825_v1 = vpop.f32.mrf.mxu2 }
 0x39e   : > { %v1826_v61 = vadd.f32 %v3544_v2, %v1825_v1 }
 0x3a0   : > { %v1847_v43 = vadd.f32 %v2312_v6, %v1826_v61 }
 0x3a2   : > { %v1863_v28 = vmax.f32 %v1847_v43, 0.0 }
 0x3a4   : > { %1879 = vst.msk [vmem:[%s3556_s4 + $0x68] sm:$0xff] %vm517_vm0, %v1863_v28 }
 0x3af   : > { %v1828_v60 = vpop.f32.mrf.mxu2 }
 0x3b0   : > { %v1829_v21 = vadd.f32 %v3544_v2, %v1828_v60 }
 0x3b2   : > { %v1848_v33 = vadd.f32 %v2313_v22, %v1829_v21 }
 0x3b4   : > { %v1864_v59 = vmax.f32 %v1848_v33, 0.0 }
 0x3b6   : > { %1880 = vst.msk [vmem:[%s3556_s4 + $0x70] sm:$0xff] %vm517_vm0, %v1864_v59 }
 0x3c6   : > { %v1831_v7 = vpop.f32.mrf.mxu2 }
 0x3c7   : > { %v1832_v0 = vadd.f32 %v3544_v2, %v1831_v7 }
 0x3c9   : > { %v1849_v10 = vadd.f32 %v2314_v9, %v1832_v0 }
 0x3cb   : > { %v1865_v53 = vmax.f32 %v1849_v10, 0.0 }
 0x3cd   : > { %1881 = vst.msk [vmem:[%s3556_s4 + $0x78] sm:$0xff] %vm517_vm0, %v1865_v53 }
 0x3ce   : > { %2432 = shalt.err (!%p2429_p12)
}
 0x3cf   : > { %s2572_s25 = smov 128  }
 0x3d0   : > { %2154 = dma.vmem_to_hbm [thread:$0]  (%p2794_p4), %s1899_s1, 2048, %s1901_s5, %s1883_s17, %s2572_s25, %s2572_s25, %s2568_s21  }
 0x3d1 PF: > { %s3803_s4 = sld [smem:[#allocation15_spill]]  ;;  %p2171_p13 = scmp.ge.s32.totalorder %s2559_s22, 2 }
 0x3d3   : > { %p2167_p1 = pnand %p2171_p13, %p2798_p6 }
 0x3d5   : > { %p2168_p2 = pneg %p2167_p1 }
 0x3d7   : > { %s1915_s23 = sand.u32 1, %s3803_s4  }
 0x3d8   : > { %s1916_s27 = scalar_lea.sflag [#allocation5], %s1915_s23 }
 0x3d9   : > { %2502 = dma.done.wait (%p2168_p2), %s1916_s27, 2048  }
 0x3da   : > { %2504 = vsyncadd (%p2168_p2), %s1916_s27, 4294965248  ;;  %s28_s22 = sadd.s32 1, %s2559_s22   ;;  %s3806_s8 = sld [smem:[#allocation14_spill]] }
 0x3db   : > { %p3672_p11 = scmp.ge.s32.totalorder %s28_s22, 6   ;;  %s3807_s14 = sld [smem:[#allocation24_spill]] }
 0x3dc   : > { %s3808_s21 = sld [smem:[#allocation16_spill]]  ;;  %s3815_s30 = smov %s2511_s10 }
 0x3dd   : > { %s3809_s17 = sld [smem:[#allocation25_spill]]  ;;  %s3816_s10 = smov %s2515_s11 }
 0x3de   : > { %s3810_s18 = sld [smem:[#allocation19_spill]]  ;;  %s3817_s11 = smov %s2841_s29 }
 0x3df   : > { %s3811_s19 = sld [smem:[#allocation20_spill]]  ;;  %s3818_s12 = smov %s2523_s13 }
 0x3e0   : > { %s3812_s20 = sld [smem:[#allocation21_spill]]  ;;  %s3819_s13 = smov %s3806_s8 }
 0x3e1   : > { %s3813_s3 = sld [smem:[#allocation22_spill]]  ;;  %s3820_s15 = smov %s2535_s16 }
 0x3e2   : > { %s3821_s16 = smov %s3808_s21 }
 0x3e3   :  { %27 = sbr.rel (!%p3672_p11) target bundleno = 22 (0x16), region = 128 }
 0x3e7   : > { %s3822_s21 = smov %s3813_s3 }
 0x3e8   :  { %1922 = vsyncpa [#allocation4], 1 }
 0x3e9   :  { %1924 = vsyncpa [#allocation4 + $0x1], 1 }
 0x3ea   :  { %1925 = vsyncpa [#allocation7], 1 }
 0x3eb   :  { %1927 = vsyncpa [#allocation7 + $0x1], 1 }
 0x3ec   :  { %1928 = vsyncpa [#allocation5], 1 }
 0x3ed   :  { %1930 = vsyncpa [#allocation5 + $0x1], 1 }

</bundles_post_ra>
